<compile_context>
chip_gen: v7x
topology: tpu7x:2x2x1
jax: 0.10.0
libtpu: 0.0.40
codegen_flags: <defaults>
</compile_context>

<pallas_src>
import functools
import math

import jax
import jax.numpy as jnp
from jax.experimental import pallas as pl
from jax.experimental.pallas import tpu as pltpu

NUM_HEADS = 4                    # SparseToDenseTransformer(num_heads=4)


def _vmem_capacity_bytes():
    try:
        return int(pltpu.get_tpu_info().vmem_capacity_bytes)
    except Exception:
        return 64 * 1024 * 1024          # conservative (v7x physical VMEM)


_VMEM_CAP = _vmem_capacity_bytes()
VMEM_LIMIT = max(32 * 1024 * 1024, min((_VMEM_CAP * 3) // 4, 96 * 1024 * 1024))
ROW_TILE = 2048                  # row tile for flattened linear-style kernels
PE_TILE = 512                    # B*N tile for the PE SharedMLP kernel
Q_TILE = 512 if _VMEM_CAP >= 100 * 1024 * 1024 else 256   # query tile (v5e/v6e vs v7x)


def _cparams(*sems):
    return pltpu.CompilerParams(dimension_semantics=sems,
                                vmem_limit_bytes=VMEM_LIMIT)


def _row_tile(rows, tile):
    """Full block for small inputs, fixed multiple-of-8 tile (ragged tail) otherwise."""
    if rows <= tile:
        return rows, 1
    return tile, pl.cdiv(rows, tile)


def _sigmoid(x):
    return 1.0 / (1.0 + jnp.exp(-x))


# --------------------------------------------------------------------------
# Pallas kernels
# --------------------------------------------------------------------------
def _inproj_pe_kernel(x_ref, g_ref, wx_ref, bx_ref, wg_ref, bg_ref, o_ref):
    # in_proj(f) + PE.mlp3(pe_feat): two bf16 matmuls + adds fused, row-tiled.
    # TODO(synk): with demo hidden_dim=32 the output is a 32-lane (masked) store;
    # production hidden_dim >= 128 makes it lane-dense.
    o_ref[...] = (jnp.dot(x_ref[...].astype(jnp.bfloat16), wx_ref[...],
                          preferred_element_type=jnp.float32) + bx_ref[...]
                  + jnp.dot(g_ref[...].astype(jnp.bfloat16), wg_ref[...],
                            preferred_element_type=jnp.float32) + bg_ref[...])


def _ffn_kernel(x_ref, w1_ref, b1_ref, w2_ref, b2_ref, o_ref):
    # y = x + Linear(ReLU(Linear(x))); 2H-wide intermediate stays in VMEM.
    x = x_ref[...]
    h = jnp.maximum(jnp.dot(x.astype(jnp.bfloat16), w1_ref[...],
                            preferred_element_type=jnp.float32) + b1_ref[...], 0.0)
    o_ref[...] = x + jnp.dot(h.astype(jnp.bfloat16), w2_ref[...],
                             preferred_element_type=jnp.float32) + b2_ref[...]


def _pe_mlp_max_kernel(g_ref, w1, b1, w2, b2, w3, b3, o_ref):
    # SharedMLP (1x1 convs, identity-init BN folded) + ReLU, then max-pool over the
    # neighborhood S (F.max_pool2d over last dim).  Tiled over the B*N axis.
    TB, S, _ = g_ref.shape
    g = g_ref[...]
    w1v = w1[...]
    # layer 1: contraction depth is only 3 -> three VPU mul-adds instead of a
    # ~3% utilized MXU pass (also removes the 3->8 channel pad).
    h = (g[:, :, 0:1] * w1v[0:1, :].reshape(1, 1, -1)
         + g[:, :, 1:2] * w1v[1:2, :].reshape(1, 1, -1)
         + g[:, :, 2:3] * w1v[2:3, :].reshape(1, 1, -1)
         + b1[...].reshape(1, 1, -1))
    h = jnp.maximum(h, 0.0).reshape(TB * S, h.shape[-1])
    h = jnp.maximum(jnp.dot(h.astype(jnp.bfloat16), w2[...],
                            preferred_element_type=jnp.float32) + b2[...], 0.0)
    h = jnp.maximum(jnp.dot(h.astype(jnp.bfloat16), w3[...],
                            preferred_element_type=jnp.float32) + b3[...], 0.0)
    o_ref[...] = jnp.max(h.reshape(TB, S, h.shape[-1]), axis=1)


def _mha_kernel(x_ref, y_ref, wq_ref, bq_ref, wkv_ref, bkv_ref, wo_ref, bo_ref,
                o_ref, kv_sc, acc_sc):
    # out = x + MHA(x, y).  Grid = (batch, query tiles); K/V projected ONCE per
    # batch into VMEM scratch (qi == 0), per-head output accumulated into scratch.
    qi = pl.program_id(1)

    @pl.when(qi == 0)
    def _():
        y = y_ref[0]                                   # (Nk, H) f32
        kv = jnp.dot(y.astype(jnp.bfloat16), wkv_ref[...],
                     preferred_element_type=jnp.float32) + bkv_ref[...]
        kv_sc[...] = kv.astype(jnp.bfloat16)           # (Nk, 2H) bf16

    x = x_ref[0]                                       # (TQ, H) f32
    q = jnp.dot(x.astype(jnp.bfloat16), wq_ref[...],
                preferred_element_type=jnp.float32) + bq_ref[...]
    H = q.shape[-1]
    dh = H // NUM_HEADS
    scale = 1.0 / math.sqrt(dh)
    kv = kv_sc[...]
    k = kv[:, :H]
    v = kv[:, H:]
    wo = wo_ref[...]                                   # (H, H) bf16
    acc_sc[...] = jnp.zeros_like(acc_sc)
    for hd in range(NUM_HEADS):                        # static unroll over heads
        sl = slice(hd * dh, (hd + 1) * dh)
        qh = q[:, sl].astype(jnp.bfloat16)
        logits = jax.lax.dot_general(qh, k[:, sl], (((1,), (1,)), ((), ())),
                                     preferred_element_type=jnp.float32) * scale
        m = jnp.max(logits, axis=-1, keepdims=True)
        e = jnp.exp(logits - m)
        p = e * pl.reciprocal(jnp.sum(e, axis=-1, keepdims=True), approx=True)
        ctx = jnp.dot(p.astype(jnp.bfloat16), v[:, sl],
                      preferred_element_type=jnp.float32)
        # concat(head outputs) @ wo == sum_h ctx_h @ wo[h*dh:(h+1)*dh, :]
        acc_sc[...] += jnp.dot(ctx.astype(jnp.bfloat16), wo[sl, :],
                               preferred_element_type=jnp.float32)
    o_ref[0] = x + acc_sc[...] + bo_ref[...]


def _outproj_cos_score_kernel(f1_ref, f2_ref, w_ref, b_ref, sw_ref, sb_ref,
                              att_ref, ss1_ref, ss2_ref,
                              o2n_sc, s2_sc, colsum_sc, m2num_sc,
                              *, inv_temp, n1, n2):
    # out_proj + cosine similarity / temperature, FUSED with the score head and the
    # row/col softmax saliency (streamed over query tiles, accumulated col sums).
    # bg token is the LAST row/col; it (and ragged tail rows) is masked out.
    qi = pl.program_id(1)
    nq = pl.num_programs(1)
    TQ = f1_ref.shape[1]

    @pl.when(qi == 0)
    def _():
        c = f2_ref[0]                                              # (N2, H) f32
        o2 = jnp.dot(c.astype(jnp.bfloat16), w_ref[...],
                     preferred_element_type=jnp.float32) + b_ref[...]
        inv2 = jax.lax.rsqrt(jnp.maximum(jnp.sum(o2 * o2, axis=-1, keepdims=True), 1e-24))
        o2n_sc[...] = (o2 * inv2).astype(jnp.bfloat16)             # (N2, cout) bf16
        s2_sc[...] = jax.lax.dot_general(sw_ref[...], c, (((1,), (1,)), ((), ())),
                                         preferred_element_type=jnp.float32) + sb_ref[...]
        colsum_sc[...] = jnp.zeros_like(colsum_sc)
        m2num_sc[...] = jnp.zeros_like(m2num_sc)

    a = f1_ref[0]                                                  # (TQ, H) f32
    o1 = jnp.dot(a.astype(jnp.bfloat16), w_ref[...],
                 preferred_element_type=jnp.float32) + b_ref[...]
    inv1 = jax.lax.rsqrt(jnp.maximum(jnp.sum(o1 * o1, axis=-1, keepdims=True), 1e-24))
    o1n = (o1 * (inv1 * inv_temp)).astype(jnp.bfloat16)
    att = jax.lax.dot_general(o1n, o2n_sc[...], (((1,), (1,)), ((), ())),
                              preferred_element_type=jnp.float32)  # (TQ, N2)
    att_ref[0] = att

    # ---- fused score / saliency streaming sums ---------------------------------
    N2 = att.shape[1]
    row_ok = (qi * TQ + jax.lax.broadcasted_iota(jnp.int32, (TQ, 1), 0)) < n1
    col_ok = jax.lax.broadcasted_iota(jnp.int32, (1, N2), 1) < n2
    valid = jnp.logical_and(row_ok, col_ok)                        # (TQ, N2)
    # |att| <= 1/temp, so a constant shift keeps exp() in range (shift cancels in
    # the softmax ratio); invalid rows/cols (bg token, ragged tail) get e = 0.
    e = jnp.where(valid, jnp.exp(att - inv_temp), 0.0)

    s1 = jax.lax.dot_general(sw_ref[...], a, (((1,), (1,)), ((), ())),
                             preferred_element_type=jnp.float32) + sb_ref[...]   # (1, TQ)
    lane_ok = (qi * TQ + jax.lax.broadcasted_iota(jnp.int32, (1, TQ), 1)) < n1
    s1_m = jnp.where(lane_ok, s1, 0.0)
    s2 = s2_sc[...]                                                # (1, N2)

    ones_row = jnp.ones((1, N2), jnp.float32)
    rowsum_r = jax.lax.dot_general(ones_row, e, (((1,), (1,)), ((), ())),
                                   preferred_element_type=jnp.float32)  # (1, TQ)
    m1num_r = jax.lax.dot_general(s2, e, (((1,), (1,)), ((), ())),
                                  preferred_element_type=jnp.float32)   # (1, TQ)
    m1_r = m1num_r * pl.reciprocal(rowsum_r, approx=True)               # (1, TQ)

    colsum_sc[...] += jnp.dot(jnp.ones((1, TQ), jnp.float32), e,
                              preferred_element_type=jnp.float32)        # (1, N2)
    m2num_sc[...] += jnp.dot(s1_m, e, preferred_element_type=jnp.float32)

    # lane-dense (2, TQ) slab: row 0 = sigmoid(score), row 1 = sigmoid(saliency)
    ss1_ref[0] = jnp.concatenate([_sigmoid(s1), _sigmoid(m1_r)], axis=0)

    @pl.when(qi == nq - 1)
    def _():
        m2 = m2num_sc[...] * pl.reciprocal(colsum_sc[...], approx=True)  # (1, N2)
        ss2_ref[0] = jnp.concatenate([_sigmoid(s2_sc[...]), _sigmoid(m2)], axis=0)


# --------------------------------------------------------------------------
# Kernel wrappers
# --------------------------------------------------------------------------
def embed_features(f, pe_feat, params):
    """in_proj(f) + PE.mlp3(pe_feat), row-tiled."""
    B, N, Cin = f.shape
    Cg = pe_feat.shape[-1]
    H = params['in_w'].shape[1]
    rows = B * N
    TM, nt = _row_tile(rows, ROW_TILE)
    x2 = f.reshape(rows, Cin).astype(jnp.float32)
    g2 = pe_feat.reshape(rows, Cg).astype(jnp.float32)
    y = pl.pallas_call(
        _inproj_pe_kernel,
        grid=(nt,),
        in_specs=[pl.BlockSpec((TM, Cin), lambda i: (i, 0)),
                  pl.BlockSpec((TM, Cg), lambda i: (i, 0)),
                  pl.BlockSpec((Cin, H), lambda i: (0, 0)),
                  pl.BlockSpec((1, H), lambda i: (0, 0)),
                  pl.BlockSpec((Cg, H), lambda i: (0, 0)),
                  pl.BlockSpec((1, H), lambda i: (0, 0))],
        out_specs=pl.BlockSpec((TM, H), lambda i: (i, 0)),
        out_shape=jax.ShapeDtypeStruct((rows, H), jnp.float32),
        compiler_params=_cparams("parallel"),
    )(x2, g2,
      params['in_w'].astype(jnp.bfloat16), params['in_b'].reshape(1, -1),
      params['pe']['w3p'].astype(jnp.bfloat16), params['pe']['b3p'].reshape(1, -1))
    return y.reshape(B, N, H)


def ffn_residual(x, prm):
    B, N, H = x.shape
    Hh = prm['w1'].shape[1]
    rows = B * N
    TM, nt = _row_tile(rows, ROW_TILE)
    x2 = x.reshape(rows, H)
    y = pl.pallas_call(
        _ffn_kernel,
        grid=(nt,),
        in_specs=[pl.BlockSpec((TM, H), lambda i: (i, 0)),
                  pl.BlockSpec((H, Hh), lambda i: (0, 0)),
                  pl.BlockSpec((1, Hh), lambda i: (0, 0)),
                  pl.BlockSpec((Hh, H), lambda i: (0, 0)),
                  pl.BlockSpec((1, H), lambda i: (0, 0))],
        out_specs=pl.BlockSpec((TM, H), lambda i: (i, 0)),
        out_shape=jax.ShapeDtypeStruct((rows, H), jnp.float32),
        compiler_params=_cparams("parallel"),
    )(x2, prm['w1'].astype(jnp.bfloat16), prm['b1'].reshape(1, -1),
      prm['w2'].astype(jnp.bfloat16), prm['b2'].reshape(1, -1))
    return y.reshape(B, N, H)


def pe_mlp_max(grouped, w1, b1, w2, b2, w3, b3):
    BN, S, C = grouped.shape
    c1, c2, cout = w1.shape[1], w2.shape[1], w3.shape[1]
    TB, nt = _row_tile(BN, PE_TILE)
    flops = 2 * BN * S * (C * c1 + c1 * c2 + c2 * cout)
    return pl.pallas_call(
        _pe_mlp_max_kernel,
        grid=(nt,),
        in_specs=[pl.BlockSpec((TB, S, C), lambda i: (i, 0, 0)),
                  pl.BlockSpec((C, c1), lambda i: (0, 0)),
                  pl.BlockSpec((1, c1), lambda i: (0, 0)),
                  pl.BlockSpec((c1, c2), lambda i: (0, 0)),
                  pl.BlockSpec((1, c2), lambda i: (0, 0)),
                  pl.BlockSpec((c2, cout), lambda i: (0, 0)),
                  pl.BlockSpec((1, cout), lambda i: (0, 0))],
        out_specs=pl.BlockSpec((TB, cout), lambda i: (i, 0)),
        out_shape=jax.ShapeDtypeStruct((BN, cout), jnp.float32),
        compiler_params=_cparams("parallel"),
        cost_estimate=pl.CostEstimate(flops=int(flops), transcendentals=0,
                                      bytes_accessed=int(4 * (grouped.size + BN * cout))),
    )(grouped, w1, b1.reshape(1, -1),
      w2.astype(jnp.bfloat16), b2.reshape(1, -1),
      w3.astype(jnp.bfloat16), b3.reshape(1, -1))


def mha_residual(x, y, prm):
    """x + MultiheadAttention(query=x, key/value=y), grid over (batch, query tiles)."""
    B, Nq, H = x.shape
    Nk = y.shape[1]
    TQ, nqt = _row_tile(Nq, Q_TILE)
    flops = 2 * B * (Nq * H * H + Nk * H * 2 * H + 2 * Nq * Nk * H + Nq * H * H)
    return pl.pallas_call(
        _mha_kernel,
        grid=(B, nqt),
        in_specs=[pl.BlockSpec((1, TQ, H), lambda bi, qi: (bi, qi, 0)),
                  pl.BlockSpec((1, Nk, H), lambda bi, qi: (bi, 0, 0)),
                  pl.BlockSpec((H, H), lambda bi, qi: (0, 0)),
                  pl.BlockSpec((1, H), lambda bi, qi: (0, 0)),
                  pl.BlockSpec((H, 2 * H), lambda bi, qi: (0, 0)),
                  pl.BlockSpec((1, 2 * H), lambda bi, qi: (0, 0)),
                  pl.BlockSpec((H, H), lambda bi, qi: (0, 0)),
                  pl.BlockSpec((1, H), lambda bi, qi: (0, 0))],
        out_specs=pl.BlockSpec((1, TQ, H), lambda bi, qi: (bi, qi, 0)),
        out_shape=jax.ShapeDtypeStruct((B, Nq, H), jnp.float32),
        scratch_shapes=[pltpu.VMEM((Nk, 2 * H), jnp.bfloat16),   # cached K/V (per batch)
                        pltpu.VMEM((TQ, H), jnp.float32)],       # per-head output acc
        compiler_params=_cparams("parallel", "arbitrary"),
        cost_estimate=pl.CostEstimate(flops=int(flops),
                                      transcendentals=int(B * Nq * Nk),
                                      bytes_accessed=int(4 * (2 * x.size + y.size))),
    )(x, y,
      prm['wq'].astype(jnp.bfloat16), prm['bq'].reshape(1, -1),
      prm['wkv'].astype(jnp.bfloat16), prm['bkv'].reshape(1, -1),
      prm['wo'].astype(jnp.bfloat16), prm['bo'].reshape(1, -1))


def outproj_cos_score(f1, f2, out_w, out_b, score_w, score_b, temp):
    """compute_feature_similarity(out_proj(f1), out_proj(f2)) fused with the score
    head and row/col softmax saliency.  bg token must be the LAST token of f1/f2.
    Returns (atten (B,N1,N2) with bg last row/col, score (B,n1+n2), saliency)."""
    B, N1, H = f1.shape
    N2 = f2.shape[1]
    cout = out_w.shape[1]
    n1, n2 = N1 - 1, N2 - 1
    TQ, nqt = _row_tile(N1, Q_TILE)
    kern = functools.partial(_outproj_cos_score_kernel,
                             inv_temp=1.0 / float(temp), n1=n1, n2=n2)
    flops = 2 * B * ((N1 + N2) * H * cout + 3 * N1 * N2 * cout)
    atten, ss1, ss2 = pl.pallas_call(
        kern,
        grid=(B, nqt),
        in_specs=[pl.BlockSpec((1, TQ, H), lambda bi, qi: (bi, qi, 0)),
                  pl.BlockSpec((1, N2, H), lambda bi, qi: (bi, 0, 0)),
                  pl.BlockSpec((H, cout), lambda bi, qi: (0, 0)),
                  pl.BlockSpec((1, cout), lambda bi, qi: (0, 0)),
                  pl.BlockSpec((1, H), lambda bi, qi: (0, 0)),
                  pl.BlockSpec((1, 1), lambda bi, qi: (0, 0))],
        out_specs=[pl.BlockSpec((1, TQ, N2), lambda bi, qi: (bi, qi, 0)),
                   pl.BlockSpec((1, 2, TQ), lambda bi, qi: (bi, 0, qi)),
                   pl.BlockSpec((1, 2, N2), lambda bi, qi: (bi, 0, 0))],
        out_shape=(jax.ShapeDtypeStruct((B, N1, N2), jnp.float32),
                   jax.ShapeDtypeStruct((B, 2, N1), jnp.float32),
                   jax.ShapeDtypeStruct((B, 2, N2), jnp.float32)),
        scratch_shapes=[pltpu.VMEM((N2, cout), jnp.bfloat16),   # cached out_proj(f2), normed
                        pltpu.VMEM((1, N2), jnp.float32),       # cached score(f2)
                        pltpu.VMEM((1, N2), jnp.float32),       # col-sum accumulator
                        pltpu.VMEM((1, N2), jnp.float32)],      # m2 numerator accumulator
        compiler_params=_cparams("parallel", "arbitrary"),
        cost_estimate=pl.CostEstimate(flops=int(flops),
                                      transcendentals=int(B * (N1 * N2 + 2 * (N1 + N2))),
                                      bytes_accessed=int(4 * (f1.size + f2.size + B * N1 * N2))),
    )(f1, f2, out_w.astype(jnp.bfloat16), out_b.reshape(1, -1),
      jnp.transpose(score_w), score_b.reshape(1, 1))
    score = jnp.concatenate([ss1[:, 0, :n1], ss2[:, 0, :n2]], axis=-1)
    saliency = jnp.concatenate([ss1[:, 1, :n1], ss2[:, 1, :n2]], axis=-1)
    return atten, score, saliency


# --------------------------------------------------------------------------
# Plain-JAX glue (grouping, transformer wrapper, pose solve)
# --------------------------------------------------------------------------
def ball_query_group(pts, radius, nsample):
    """pointnet2 ball_query (first-nsample-within-radius) + relative grouping."""
    # TODO(synk): QueryAndLRFGroup's local-reference-frame rotation is not reproducible
    # from the reference snippet; plain QueryAndGroup relative-xyz grouping is used.
    # TODO(synk): replace the O(N^2) top_k selection with a Pallas first-k-within-radius
    # kernel for production-sized point clouds.
    B, N, _ = pts.shape
    sq = jnp.sum(pts * pts, axis=-1)                                   # (B, N)
    d2 = sq[:, :, None] + sq[:, None, :] - 2.0 * jnp.einsum('bnc,bmc->bnm', pts, pts)
    valid = d2 <= radius * radius
    j = jnp.arange(N, dtype=jnp.int32)
    key = jnp.where(valid, 2 * N - j, N - j)          # valid beats invalid; low index first
    _, idx = jax.lax.top_k(key, nsample)              # (B, N, nsample)
    cnt = jnp.sum(valid, axis=-1, keepdims=True)
    ks = jnp.arange(nsample)[None, None, :]
    idx = jnp.where(ks < cnt, idx, idx[..., :1])      # pad with first found index
    grouped = jax.vmap(lambda p, ix: p[ix])(pts, idx)  # (B, N, ns, 3)
    return grouped - pts[:, :, None, :]


def pe_features(pts, prm):
    """PositionalEncoding up to (but not including) mlp3 -> (B, N, 256)."""
    B, N, _ = pts.shape
    feats = []
    for gkey, r, ns in (('g1', prm['r1'], prm['ns1']), ('g2', prm['r2'], prm['ns2'])):
        rel = ball_query_group(pts, r, ns).reshape(B * N, ns, 3)
        p = prm[gkey]
        f = pe_mlp_max(rel, p['w1'], p['b1'], p['w2'], p['b2'], p['w3'], p['b3'])
        feats.append(f.reshape(B, N, -1))
    return jnp.concatenate(feats, axis=-1)             # (B, N, 256)


def transformer_block(f1, f2, prm):
    # TODO(synk): SparseToDenseTransformer's fps_idx-based sparse attention and
    # geometric-embedding bias are not reproducible from the reference snippet;
    # dense self+cross multi-head attention (+ReLU FFN, bg token included) is used.
    f1 = mha_residual(f1, f1, prm['self_attn'])
    f2 = mha_residual(f2, f2, prm['self_attn'])
    a = mha_residual(f1, f2, prm['cross_attn'])
    b = mha_residual(f2, f1, prm['cross_attn'])
    f1, f2 = a, b
    f1 = ffn_residual(f1, prm['ffn'])
    f2 = ffn_residual(f2, prm['ffn'])
    return f1, f2


def compute_fine_Rt_overlap(atten, score, p1, p2):
    # TODO(synk): exact reference implementation unavailable; weighted soft-Procrustes
    # (softmax soft-correspondence + weighted Kabsch via SVD) approximation in plain JAX.
    n1 = p1.shape[1]
    n2 = p2.shape[1]
    a = atten[:, :n1, :n2]                                # bg token is the LAST row/col
    probs = jax.nn.softmax(a, axis=-1)
    p2_corr = jnp.matmul(probs, p2)                       # (B, n1, 3)
    w = score[:, :n1]
    w = w / (jnp.sum(w, axis=1, keepdims=True) + 1e-8)
    c1 = jnp.sum(w[..., None] * p1, axis=1)
    c2 = jnp.sum(w[..., None] * p2_corr, axis=1)
    H = jnp.einsum('bn,bni,bnj->bij', w, p2_corr - c2[:, None, :], p1 - c1[:, None, :])
    U, _, Vt = jnp.linalg.svd(H)
    V = jnp.swapaxes(Vt, -1, -2)
    UT = jnp.swapaxes(U, -1, -2)
    d = jnp.linalg.det(jnp.matmul(V, UT))
    D = jnp.stack([jnp.ones_like(d), jnp.ones_like(d), d], axis=-1)
    R = jnp.matmul(V * D[:, None, :], UT)
    t = c1 - jnp.einsum('bij,bj->bi', R, c2)
    pose_score = jnp.mean(score, axis=1)
    return R, t, pose_score


def fine_point_matching_oneref_forward(params, cfg, p1, f1, geo1, fps_idx1,
                                       p2, f2, geo2, fps_idx2, radius, end_points):
    """Eval-mode forward of FinePointMatchingOneRef."""
    B, n1, _ = p1.shape
    H = cfg['hidden_dim']
    if ('init_R' in end_points) and ('init_t' in end_points):
        init_R, init_t = end_points['init_R'], end_points['init_t']
        p1_ = jnp.einsum('bnc,bcd->bnd', p1 - init_t[:, None, :], init_R)
    else:
        p1_ = p1

    pe1 = pe_features(p1_, params['pe'])
    pe2 = pe_features(p2, params['pe'])
    f1 = embed_features(f1, pe1, params)           # in_proj + PE.mlp3 fused
    f2 = embed_features(f2, pe2, params)
    bg = jnp.broadcast_to(params['bg_token'], (B, 1, H)).astype(jnp.float32)
    # bg token appended LAST (reference puts it first) so downstream score/saliency
    # slices are aligned [:n] prefixes; dense attention is permutation-equivariant,
    # so per-token results match the reference ordering.
    f1 = jnp.concatenate([f1, bg], axis=1)         # (B, n1+1, H)
    f2 = jnp.concatenate([f2, bg], axis=1)         # (B, n2+1, H)

    for idx in range(cfg['nblock']):
        f1, f2 = transformer_block(f1, f2, params['blocks'][idx])

    # eval path: only the last block's score head / similarity contribute.
    atten, score, saliency = outproj_cos_score(
        f1, f2, params['out_w'], params['out_b'],
        params['score_w'][-1], params['score_b'][-1], cfg['temp'])

    pred_R, pred_t, pose_score = compute_fine_Rt_overlap(atten, score, p1, p2)
    out = dict(end_points)
    out['pred_R'] = pred_R
    out['pred_t'] = pred_t * (radius.reshape(-1, 1) + 1e-6)
    out['pred_pose_score'] = pose_score
    out['fine_score'] = score
    out['fine_saliency'] = saliency
    out['fine_atten'] = atten                      # bg token is the last row/col
    return out


# --------------------------------------------------------------------------
# Deterministic parameter init (synthetic, mirrors module __init__ shapes)
# --------------------------------------------------------------------------
def init_params(key, cfg):
    keys = iter(jax.random.split(key, 160))

    def nrm(shape, s=0.05):
        return jax.random.normal(next(keys), shape, jnp.float32) * s

    H = cfg['hidden_dim']
    bn_s = 1.0 / math.sqrt(1.0 + 1e-5)   # identity-initialized BatchNorm folded into convs

    def shared_mlp():
        return dict(w1=nrm((3, 32)) * bn_s, b1=nrm((32,)) * bn_s,
                    w2=nrm((32, 64)) * bn_s, b2=nrm((64,)) * bn_s,
                    w3=nrm((64, 128)) * bn_s, b3=nrm((128,)) * bn_s)

    pe = dict(g1=shared_mlp(), g2=shared_mlp(),
              w3p=nrm((256, H)), b3p=nrm((H,)),
              r1=cfg['pe_radius1'], r2=cfg['pe_radius2'],
              ns1=cfg['nsample1'], ns2=cfg['nsample2'])

    def attn():
        wk, wv = nrm((H, H)), nrm((H, H))
        bk, bv = nrm((H,)), nrm((H,))
        return dict(wq=nrm((H, H)), bq=nrm((H,)),
                    wkv=jnp.concatenate([wk, wv], axis=1),     # fused K/V projection
                    bkv=jnp.concatenate([bk, bv], axis=0),
                    wo=nrm((H, H)), bo=nrm((H,)))

    blocks = []
    for _ in range(cfg['nblock']):
        blocks.append(dict(self_attn=attn(), cross_attn=attn(),
                           ffn=dict(w1=nrm((H, 2 * H)), b1=nrm((2 * H,)),
                                    w2=nrm((2 * H, H)), b2=nrm((H,)))))

    return dict(
        in_w=nrm((cfg['input_dim'], H)), in_b=nrm((H,)),
        out_w=nrm((H, cfg['out_dim'])), out_b=nrm((cfg['out_dim'],)),
        bg_token=nrm((1, 1, H), 0.02),
        pe=pe, blocks=blocks,
        score_w=[nrm((H, 1)) for _ in range(cfg['nblock'])],
        score_b=[nrm((1,)) for _ in range(cfg['nblock'])],
    )


# --------------------------------------------------------------------------
if __name__ == "__main__":
    cfg = dict(input_dim=32, hidden_dim=32, out_dim=32, nblock=2,
               pe_radius1=0.6, pe_radius2=1.0, nsample1=8, nsample2=16,
               sim_type='cosine', temp=0.1, normalize_feat=True)

    key = jax.random.PRNGKey(0)
    kp, k1, k2, k3, k4, k5 = jax.random.split(key, 6)
    params = init_params(kp, cfg)

    B, n1, n2 = 2, 16, 16
    p1 = jax.random.uniform(k1, (B, n1, 3), jnp.float32, -1.0, 1.0)
    p2 = jax.random.uniform(k2, (B, n2, 3), jnp.float32, -1.0, 1.0)
    f1 = jax.random.normal(k3, (B, n1, cfg['input_dim']), jnp.float32)
    f2 = jax.random.normal(k4, (B, n2, cfg['input_dim']), jnp.float32)
    geo1 = jnp.zeros((B, n1, n1), jnp.float32)   # accepted but unused (see TODO in transformer_block)
    geo2 = jnp.zeros((B, n2, n2), jnp.float32)
    fps_idx1 = jnp.tile(jnp.arange(8, dtype=jnp.int32)[None], (B, 1))
    fps_idx2 = jnp.tile(jnp.arange(8, dtype=jnp.int32)[None], (B, 1))
    radius = jax.random.uniform(k5, (B,), jnp.float32, 0.5, 1.5)
    end_points = {'init_R': jnp.tile(jnp.eye(3, dtype=jnp.float32)[None], (B, 1, 1)),
                  'init_t': jnp.zeros((B, 3), jnp.float32)}

    out = fine_point_matching_oneref_forward(params, cfg, p1, f1, geo1, fps_idx1,
                                             p2, f2, geo2, fps_idx2, radius, end_points)
    jax.block_until_ready(out['pred_R'])
    jax.block_until_ready(out['pred_t'])
    jax.block_until_ready(out['pred_pose_score'])
    jax.block_until_ready(out['fine_score'])
    jax.block_until_ready(out['fine_saliency'])
    print("KERNEL_OK")
</pallas_src>

<mosaic_0001>
module attributes {stable_mosaic.version = 11 : i64} {
  func.func @_pe_mlp_max_kernel(%arg0: i32, %arg1: memref<32x8x3xf32, #tpu.memory_space<vmem>>, %arg2: memref<3x32xf32, #tpu.memory_space<vmem>>, %arg3: memref<1x32xf32, #tpu.memory_space<vmem>>, %arg4: memref<32x64xbf16, #tpu.memory_space<vmem>>, %arg5: memref<1x64xf32, #tpu.memory_space<vmem>>, %arg6: memref<64x128xbf16, #tpu.memory_space<vmem>>, %arg7: memref<1x128xf32, #tpu.memory_space<vmem>>, %arg8: memref<32x128xf32, #tpu.memory_space<vmem>>) attributes {dimension_semantics = [#tpu.dimension_semantics<parallel>], iteration_bounds = array<i64: 1>, scalar_prefetch = 0 : i64, scratch_operands = 0 : i64, tpu.core_type = #tpu.core_type<tc>, window_params = [{transform_indices = @transform_0, window_bounds = array<i64: 32, 8, 3>}, {pipeline_mode = #tpu.pipeline_mode<synchronous>, transform_indices = @transform_1, window_bounds = array<i64: 3, 32>}, {pipeline_mode = #tpu.pipeline_mode<synchronous>, transform_indices = @transform_2, window_bounds = array<i64: 1, 32>}, {pipeline_mode = #tpu.pipeline_mode<synchronous>, transform_indices = @transform_3, window_bounds = array<i64: 32, 64>}, {pipeline_mode = #tpu.pipeline_mode<synchronous>, transform_indices = @transform_4, window_bounds = array<i64: 1, 64>}, {pipeline_mode = #tpu.pipeline_mode<synchronous>, transform_indices = @transform_5, window_bounds = array<i64: 64, 128>}, {pipeline_mode = #tpu.pipeline_mode<synchronous>, transform_indices = @transform_6, window_bounds = array<i64: 1, 128>}, {transform_indices = @transform_7, window_bounds = array<i64: 32, 128>}]} {
    %c0 = arith.constant 0 : index
    %c0_0 = arith.constant 0 : index
    %c0_1 = arith.constant 0 : index
    %0 = vector.load %arg1[%c0, %c0_0, %c0_1] : memref<32x8x3xf32, #tpu.memory_space<vmem>>, vector<32x8x3xf32>
    %c0_2 = arith.constant 0 : index
    %c0_3 = arith.constant 0 : index
    %1 = vector.load %arg2[%c0_2, %c0_3] : memref<3x32xf32, #tpu.memory_space<vmem>>, vector<3x32xf32>
    %2 = vector.extract_strided_slice %0 {offsets = [0, 0, 0], sizes = [32, 8, 1], strides = [1, 1, 1]} : vector<32x8x3xf32> to vector<32x8x1xf32>
    %3 = vector.extract_strided_slice %1 {offsets = [0, 0], sizes = [1, 32], strides = [1, 1]} : vector<3x32xf32> to vector<1x32xf32>
    %4 = vector.shape_cast %3 : vector<1x32xf32> to vector<1x1x32xf32>
    %5 = vector.broadcast %2 : vector<32x8x1xf32> to vector<32x8x32xf32>
    %6 = vector.broadcast %4 : vector<1x1x32xf32> to vector<32x8x32xf32>
    %7 = arith.mulf %5, %6 : vector<32x8x32xf32>
    %8 = vector.extract_strided_slice %0 {offsets = [0, 0, 1], sizes = [32, 8, 1], strides = [1, 1, 1]} : vector<32x8x3xf32> to vector<32x8x1xf32>
    %9 = vector.extract_strided_slice %1 {offsets = [1, 0], sizes = [1, 32], strides = [1, 1]} : vector<3x32xf32> to vector<1x32xf32>
    %10 = vector.shape_cast %9 : vector<1x32xf32> to vector<1x1x32xf32>
    %11 = vector.broadcast %8 : vector<32x8x1xf32> to vector<32x8x32xf32>
    %12 = vector.broadcast %10 : vector<1x1x32xf32> to vector<32x8x32xf32>
    %13 = arith.mulf %11, %12 : vector<32x8x32xf32>
    %14 = arith.addf %7, %13 : vector<32x8x32xf32>
    %15 = vector.extract_strided_slice %0 {offsets = [0, 0, 2], sizes = [32, 8, 1], strides = [1, 1, 1]} : vector<32x8x3xf32> to vector<32x8x1xf32>
    %16 = vector.extract_strided_slice %1 {offsets = [2, 0], sizes = [1, 32], strides = [1, 1]} : vector<3x32xf32> to vector<1x32xf32>
    %17 = vector.shape_cast %16 : vector<1x32xf32> to vector<1x1x32xf32>
    %18 = vector.broadcast %15 : vector<32x8x1xf32> to vector<32x8x32xf32>
    %19 = vector.broadcast %17 : vector<1x1x32xf32> to vector<32x8x32xf32>
    %20 = arith.mulf %18, %19 : vector<32x8x32xf32>
    %21 = arith.addf %14, %20 : vector<32x8x32xf32>
    %c0_4 = arith.constant 0 : index
    %c0_5 = arith.constant 0 : index
    %22 = vector.load %arg3[%c0_4, %c0_5] : memref<1x32xf32, #tpu.memory_space<vmem>>, vector<1x32xf32>
    %23 = vector.shape_cast %22 : vector<1x32xf32> to vector<1x1x32xf32>
    %24 = vector.broadcast %23 : vector<1x1x32xf32> to vector<32x8x32xf32>
    %25 = arith.addf %21, %24 : vector<32x8x32xf32>
    %cst = arith.constant 0.000000e+00 : f32
    %26 = vector.broadcast %cst : f32 to vector<32x8x32xf32>
    %27 = arith.maximumf %25, %26 : vector<32x8x32xf32>
    %28 = vector.shape_cast %27 : vector<32x8x32xf32> to vector<256x32xf32>
    %29 = arith.truncf %28 : vector<256x32xf32> to vector<256x32xbf16>
    %c0_6 = arith.constant 0 : index
    %c0_7 = arith.constant 0 : index
    %30 = vector.load %arg4[%c0_6, %c0_7] : memref<32x64xbf16, #tpu.memory_space<vmem>>, vector<32x64xbf16>
    %cst_8 = arith.constant dense<0.000000e+00> : vector<256x64xf32>
    %31 = tpu.matmul %29, %30, %cst_8 {dimension_numbers = #tpu.dot_dimension_numbers<[1], [0], [0], [1], [0, 0, 1, 1], [], []>} : vector<256x32xbf16>, vector<32x64xbf16>, vector<256x64xf32> -> vector<256x64xf32>
    %c0_9 = arith.constant 0 : index
    %c0_10 = arith.constant 0 : index
    %32 = vector.load %arg5[%c0_9, %c0_10] : memref<1x64xf32, #tpu.memory_space<vmem>>, vector<1x64xf32>
    %33 = vector.broadcast %32 : vector<1x64xf32> to vector<256x64xf32>
    %34 = arith.addf %31, %33 : vector<256x64xf32>
    %cst_11 = arith.constant 0.000000e+00 : f32
    %35 = vector.broadcast %cst_11 : f32 to vector<256x64xf32>
    %36 = arith.maximumf %34, %35 : vector<256x64xf32>
    %37 = arith.truncf %36 : vector<256x64xf32> to vector<256x64xbf16>
    %c0_12 = arith.constant 0 : index
    %c0_13 = arith.constant 0 : index
    %38 = vector.load %arg6[%c0_12, %c0_13] : memref<64x128xbf16, #tpu.memory_space<vmem>>, vector<64x128xbf16>
    %cst_14 = arith.constant dense<0.000000e+00> : vector<256x128xf32>
    %39 = tpu.matmul %37, %38, %cst_14 {dimension_numbers = #tpu.dot_dimension_numbers<[1], [0], [0], [1], [0, 0, 1, 1], [], []>} : vector<256x64xbf16>, vector<64x128xbf16>, vector<256x128xf32> -> vector<256x128xf32>
    %c0_15 = arith.constant 0 : index
    %c0_16 = arith.constant 0 : index
    %40 = vector.load %arg7[%c0_15, %c0_16] : memref<1x128xf32, #tpu.memory_space<vmem>>, vector<1x128xf32>
    %41 = vector.broadcast %40 : vector<1x128xf32> to vector<256x128xf32>
    %42 = arith.addf %39, %41 : vector<256x128xf32>
    %cst_17 = arith.constant 0.000000e+00 : f32
    %43 = vector.broadcast %cst_17 : f32 to vector<256x128xf32>
    %44 = arith.maximumf %42, %43 : vector<256x128xf32>
    %45 = vector.shape_cast %44 : vector<256x128xf32> to vector<32x8x128xf32>
    %cst_18 = arith.constant dense<0xFF800000> : vector<32x128xf32>
    %46 = vector.multi_reduction <maximumf>, %45, %cst_18 [1] : vector<32x8x128xf32> to vector<32x128xf32>
    %c0_19 = arith.constant 0 : index
    %c0_20 = arith.constant 0 : index
    %47 = vector.load %arg8[%c0_19, %c0_20] : memref<32x128xf32, #tpu.memory_space<vmem>>, vector<32x128xf32>
    tpu.vector_store %arg8[%c0_19, %c0_20], %46 {strides = array<i32>} : memref<32x128xf32, #tpu.memory_space<vmem>>, vector<32x128xf32>,
    return
  }
  func.func @transform_0(%arg0: i32) -> (i32, i32, i32) {
    %c0_i32 = arith.constant 0 : i32
    %c0_i32_0 = arith.constant 0 : i32
    %c0_i32_1 = arith.constant 0 : i32
    return %arg0, %c0_i32, %c0_i32_0 : i32, i32, i32
  }
  func.func @transform_1(%arg0: i32) -> (i32, i32) {
    %c0_i32 = arith.constant 0 : i32
    %c0_i32_0 = arith.constant 0 : i32
    %c0_i32_1 = arith.constant 0 : i32
    return %c0_i32, %c0_i32_0 : i32, i32
  }
  func.func @transform_2(%arg0: i32) -> (i32, i32) {
    %c0_i32 = arith.constant 0 : i32
    %c0_i32_0 = arith.constant 0 : i32
    %c0_i32_1 = arith.constant 0 : i32
    return %c0_i32, %c0_i32_0 : i32, i32
  }
  func.func @transform_3(%arg0: i32) -> (i32, i32) {
    %c0_i32 = arith.constant 0 : i32
    %c0_i32_0 = arith.constant 0 : i32
    %c0_i32_1 = arith.constant 0 : i32
    return %c0_i32, %c0_i32_0 : i32, i32
  }
  func.func @transform_4(%arg0: i32) -> (i32, i32) {
    %c0_i32 = arith.constant 0 : i32
    %c0_i32_0 = arith.constant 0 : i32
    %c0_i32_1 = arith.constant 0 : i32
    return %c0_i32, %c0_i32_0 : i32, i32
  }
  func.func @transform_5(%arg0: i32) -> (i32, i32) {
    %c0_i32 = arith.constant 0 : i32
    %c0_i32_0 = arith.constant 0 : i32
    %c0_i32_1 = arith.constant 0 : i32
    return %c0_i32, %c0_i32_0 : i32, i32
  }
  func.func @transform_6(%arg0: i32) -> (i32, i32) {
    %c0_i32 = arith.constant 0 : i32
    %c0_i32_0 = arith.constant 0 : i32
    %c0_i32_1 = arith.constant 0 : i32
    return %c0_i32, %c0_i32_0 : i32, i32
  }
  func.func @transform_7(%arg0: i32) -> (i32, i32) {
    %c0_i32 = arith.constant 0 : i32
    %c0_i32_0 = arith.constant 0 : i32
    return %arg0, %c0_i32 : i32, i32
  }
}

</mosaic_0001>

<bundles_post_ra>
// kernel: tpu_custom_call.1
= control target key start
LH: loop header
LB: loop body
LE: loop exit
PB: predicated region body
PF: predicated region fallthrough
CT: control target
= control target key end

     0   :  { %v1816_v2 = vmov 1   ;;  %v1817_v7 = vmov 0   ;;  %s2447_s0 = inlined_call_operand.vmem [shape: f32[32,8,3], index: 0, kind: input, shape index: {}]   ;;  %s2448_s1 = inlined_call_operand.vmem [shape: f32[3,32], index: 1, kind: input, shape index: {}]   ;;  %s2449_s2 = inlined_call_operand.vmem [shape: f32[1,32], index: 2, kind: input, shape index: {}]   ;;  %s2450_s3 = inlined_call_operand.vmem [shape: bf16[32,64], index: 3, kind: input, shape index: {}]   ;;  %s2451_s4 = inlined_call_operand.vmem [shape: f32[1,64], index: 4, kind: input, shape index: {}]   ;;  %s2452_s5 = inlined_call_operand.vmem [shape: bf16[64,128], index: 5, kind: input, shape index: {}]   ;;  %s2453_s6 = inlined_call_operand.vmem [shape: f32[1,128], index: 6, kind: input, shape index: {}]   ;;  %s2454_s7 = inlined_call_operand.hbm [shape: f32[32,128], index: 7, kind: output, shape index: {}]  }
   0x1   :  { %v30_v0 = vld [vmem:[%s2447_s0 + $0x10] sm:$0xff]  ;;  %v28_v1 = vld [vmem:[%s2447_s0] sm:$0xff]  ;;  %1744 = vset.pattern.permute.xlu0 %v1816_v2  ;;  %1742 = vset.pattern.permute.xlu1 %v1816_v2  ;;  %v33_v3 = vld [vmem:[%s2447_s0 + $0x28] sm:$0xff] }
   0x2   :  { %266 = vperm.xlu0 %1744, %v30_v0   ;;  %258 = vperm.xlu1 %1742, %v28_v1   ;;  %v29_v4 = vld [vmem:[%s2447_s0 + $0x8] sm:$0xff]  ;;  %v34_v5 = vld [vmem:[%s2447_s0 + $0x30] sm:$0xff]  ;;  %v31_v6 = vld [vmem:[%s2447_s0 + $0x18] sm:$0xff] }
   0x6   :  { %278 = vperm.xlu0 %1744, %v33_v3   ;;  %262 = vperm.xlu1 %1742, %v29_v4  }
   0xa   :  { %282 = vperm.xlu0 %1744, %v34_v5   ;;  %1743 = vset.pattern.permute.xlu1 %v1817_v7 }
   0xb   :  { %78 = vperm.xlu1 %1743, %v31_v6  }
   0xc   :  { %12 = vsyncpa [#allocation3], 0  ;;  %v1818_v8 = vmov 2   ;;  %v32_v9 = vld [vmem:[%s2447_s0 + $0x20] sm:$0xff]  ;;  %v35_v10 = vld [vmem:[%s2447_s0 + $0x38] sm:$0xff]  ;;  %v221_v54 = vlaneseq  ;;  %vm759_vm0 = vcmask 261120  }
   0xd   :  { %v37_v11 = vld [vmem:[%s2447_s0 + $0x48] sm:$0xff]  ;;  %v1898_v12 = vld [vmem:[%s2447_s0 + $0x60] sm:$0xff]  ;;  %v1904_v13 = vld [vmem:[%s2447_s0 + $0x78] sm:$0xff]  ;;  %vm1056_vm1 = vcmask 523264   ;;  %vm1522_vm2 = vcmask 1041409   ;;  %vm1524_vm3 = vcmask 1042434  }
   0xe   :  { %1750 = vset.pattern.permute.xlu0 %v1818_v8  ;;  %v1911_v14 = vld [vmem:[%s2447_s0 + $0x88] sm:$0xff]  ;;  %v1918_v15 = vld [vmem:[%s2447_s0 + $0xa0] sm:$0xff]  ;;  %v1925_v16 = vld [vmem:[%s2447_s0 + $0xb8] sm:$0xff]  ;;  %v222_v57 = vshrl.u32 %v221_v54, 7  ;;  %vm1526_vm4 = vcmask 1043459   ;;  %vm1528_vm5 = vcmask 1044484  }
   0xf   :  { %458 = vperm.xlu0 %1750, %v29_v4   ;;  %1745 = vset.pattern.permute.xlu1 %v1816_v2  ;;  %v1931_v17 = vld [vmem:[%s2447_s0 + $0xc8] sm:$0xff]  ;;  %v36_v18 = vld [vmem:[%s2447_s0 + $0x40] sm:$0xff]  ;;  %v38_v21 = vld [vmem:[%s2447_s0 + $0x50] sm:$0xff]  ;;  %vm1530_vm6 = vcmask 1045509   ;;  %vm1532_vm7 = vcmask 1046534   ;;  %vm1534_vm8 = vcmask 1047559  }
  0x10   :  { %270 = vperm.xlu1 %1745, %v31_v6   ;;  %v1786_v19 = vld [vmem:[%s2450_s3] sm:$0xff]   ;;  %v1787_v20 = vld [vmem:[%s2450_s3 + $0x8] sm:$0xff]   ;;  %v39_v22 = vld [vmem:[%s2447_s0 + $0x58] sm:$0xff]  ;;  %v387_v60 = vsub.s32 1, %v222_v57  ;;  %v223_v62 = vsub.s32 0, %v222_v57  ;;  %v583_v63 = vsub.s32 2, %v222_v57 }
  0x11   :  { %1660 = vmatprep.subr.bf16.mxu0 %v1786_v19  ;;  %v1961_v23 = vld [vmem:[%s2447_s0 + $0x90] sm:$0xff]  ;;  %v1976_v25 = vld [vmem:[%s2447_s0 + $0xe0] sm:$0xff]  ;;  %v41_v26 = vld [vmem:[%s2447_s0 + $0x68] sm:$0xff] }
  0x12   :  { %1661 = vmatpush3.bf16.msra.mxu0 %v1786_v19  ;;  %v1970_v24 = vld [vmem:[%s2447_s0 + $0xd0] sm:$0xff]  ;;  %v1996_v28 = vld [vmem:[%s2447_s0 + $0xa8] sm:$0xff]  ;;  %v44_v34 = vld [vmem:[%s2447_s0 + $0x80] sm:$0xff] }
  0x13   :  { %470 = vperm.xlu0 %1750, %v32_v9   ;;  %1662 = vmatprep.subr.bf16.mxu0 %v1787_v20  ;;  %v42_v27 = vld [vmem:[%s2447_s0 + $0x70] sm:$0xff]  ;;  %v2022_v35 = vld [vmem:[%s2447_s0 + $0xe8] sm:$0xff]  ;;  %v47_v43 = vld [vmem:[%s2447_s0 + $0x98] sm:$0xff] }
  0x14   :  { %1746 = vset.pattern.permute.xlu1 %v1818_v8  ;;  %v2003_v29 = vld [vmem:[%s2447_s0 + $0xb0] sm:$0xff]  ;;  %v2046_v44 = vld [vmem:[%s2447_s0 + $0xf8] sm:$0xff]  ;;  %v60_v61 = vld [vmem:[%s2448_s1] sm:$0x7] }
  0x15   :  { %454 = vperm.xlu1 %1746, %v28_v1   ;;  %v2031_v38 = vld [vmem:[%s2447_s0 + $0xf0] sm:$0xff] }
  0x16   :  { %1663 = vmatpush3.bf16.msra.mxu0 %v1787_v20 }
  0x17   :  { %482 = vperm.xlu0 %1750, %v35_v10  }
  0x19   :  { %462 = vperm.xlu1 %1746, %v30_v0  }
  0x1b   :  { %490 = vperm.xlu0 %1750, %v37_v11  }
  0x1d   :  { %466 = vperm.xlu1 %1746, %v31_v6  }
  0x1f   :  { %502 = vperm.xlu0 %1750, %v1898_v12  }
  0x21   :  { %1747 = vset.pattern.permute.xlu1 %v1817_v7 }
  0x22   :  { %88 = vperm.xlu1 %1747, %v33_v3  }
  0x23   :  { %514 = vperm.xlu0 %1750, %v1904_v13  }
  0x26   :  { %1748 = vset.pattern.permute.xlu1 %v1816_v2 }
  0x27   :  { %522 = vperm.xlu0 %1750, %v1911_v14   ;;  %274 = vperm.xlu1 %1748, %v32_v9  }
  0x2b   :  { %534 = vperm.xlu0 %1750, %v1918_v15   ;;  %1749 = vset.pattern.permute.xlu1 %v1817_v7 }
  0x2c   :  { %93 = vperm.xlu1 %1749, %v34_v5  }
  0x2f   :  { %546 = vperm.xlu0 %1750, %v1925_v16  }
  0x30   :  { %98 = vperm.xlu1 %1749, %v35_v10  }
  0x33   :  { %554 = vperm.xlu0 %1750, %v1931_v17  }
  0x34   :  { %1751 = vset.pattern.permute.xlu1 %v1816_v2 }
  0x35   :  { %286 = vperm.xlu1 %1751, %v35_v10  }
  0x37   :  { %1778 = vset.pattern.permute.xlu0 %v1817_v7 }
  0x38   :  { %63 = vperm.xlu0 %1778, %v28_v1   ;;  %v2080_v1 = vrot.slane %v60_v61, %v387_v60 }
  0x39   :  { %1752 = vset.pattern.permute.xlu1 %v1818_v8 }
  0x3a   :  { %474 = vperm.xlu1 %1752, %v33_v3  }
  0x3c   :  { %68 = vperm.xlu0 %1778, %v29_v4   ;;  %v2082_v4 = vrot.slane %v60_v61, %v223_v62 }
  0x3e   :  { %478 = vperm.xlu1 %1752, %v34_v5   ;;  %v2084_v5 = vrot.slane %v60_v61, %v583_v63 }
  0x40   :  { %73 = vperm.xlu0 %1778, %v30_v0  }
  0x42   :  { %1753 = vset.pattern.permute.xlu1 %v1817_v7 }
  0x43   :  { %103 = vperm.xlu1 %1753, %v36_v18  }
  0x44   :  { %83 = vperm.xlu0 %1778, %v32_v9  }
  0x47   :  { %1754 = vset.pattern.permute.xlu1 %v1816_v2 }
  0x48   :  { %108 = vperm.xlu0 %1778, %v37_v11   ;;  %290 = vperm.xlu1 %1754, %v36_v18  }
  0x4c   :  { %113 = vperm.xlu0 %1778, %v38_v21   ;;  %294 = vperm.xlu1 %1754, %v37_v11  }
  0x50   :  { %123 = vperm.xlu0 %1778, %v1898_v12   ;;  %1755 = vset.pattern.permute.xlu1 %v1817_v7 }
  0x51   :  { %118 = vperm.xlu1 %1755, %v39_v22  }
  0x54   :  { %148 = vperm.xlu0 %1778, %v1911_v14  }
  0x55   :  { %1756 = vset.pattern.permute.xlu1 %v1816_v2 }
  0x56   :  { %302 = vperm.xlu1 %1756, %v39_v22  }
  0x58   :  { %153 = vperm.xlu0 %1778, %v1961_v23  }
  0x5a   :  { %1757 = vset.pattern.permute.xlu1 %v1818_v8 }
  0x5b   :  { %486 = vperm.xlu1 %1757, %v36_v18  }
  0x5c   :  { %163 = vperm.xlu0 %1778, %v1918_v15  }
  0x5f   :  { %494 = vperm.xlu1 %1757, %v38_v21  }
  0x60   :  { %188 = vperm.xlu0 %1778, %v1931_v17  }
  0x63   :  { %498 = vperm.xlu1 %1757, %v39_v22  }
  0x64   :  { %193 = vperm.xlu0 %1778, %v1970_v24  }
  0x67   :  { %1758 = vset.pattern.permute.xlu1 %v1817_v7 }
  0x68   :  { %203 = vperm.xlu0 %1778, %v1976_v25   ;;  %128 = vperm.xlu1 %1758, %v41_v26  }
  0x6c   :  { %1779 = vset.pattern.permute.xlu0 %v1816_v2  ;;  %1759 = vset.pattern.permute.xlu1 %v1816_v2 }
  0x6d   :  { %298 = vperm.xlu0 %1779, %v38_v21   ;;  %306 = vperm.xlu1 %1759, %v1898_v12  }
  0x71   :  { %310 = vperm.xlu0 %1779, %v41_v26   ;;  %1760 = vset.pattern.permute.xlu1 %v1817_v7 }
  0x72   :  { %133 = vperm.xlu1 %1760, %v42_v27  }
  0x75   :  { %314 = vperm.xlu0 %1779, %v42_v27  }
  0x76   :  { %138 = vperm.xlu1 %1760, %v1904_v13  }
  0x79   :  { %330 = vperm.xlu0 %1779, %v1961_v23  }
  0x7a   :  { %1761 = vset.pattern.permute.xlu1 %v1816_v2 }
  0x7b   :  { %318 = vperm.xlu1 %1761, %v1904_v13  }
  0x7d   :  { %342 = vperm.xlu0 %1779, %v1996_v28  }
  0x7f   :  { %1762 = vset.pattern.permute.xlu1 %v1818_v8 }
  0x80   :  { %506 = vperm.xlu1 %1762, %v41_v26  }
  0x81   :  { %v2006_v30 = vpop.permute.xlu1 %258  ;;  %v2008_v31 = vpop.permute.xlu0 %266  ;;  %346 = vperm.xlu0 %1779, %v2003_v29  }
  0x82   :  { %v389_v9 = vmul.f32 %v2080_v1, %v2006_v30 }
  0x84   :  { %510 = vperm.xlu1 %1762, %v42_v27  }
  0x85   :  { %v2011_v32 = vpop.permute.xlu1 %262  ;;  %v2013_v33 = vpop.permute.xlu0 %278  ;;  %362 = vperm.xlu0 %1779, %v1970_v24  }
  0x86   :  { %v390_v19 = vmul.f32 %v2080_v1, %v2011_v32  ;;  %v394_v27 = vmul.f32 %v2080_v1, %v2013_v33 }
  0x88   :  { %1763 = vset.pattern.permute.xlu1 %v1817_v7 }
  0x89   :  { %143 = vperm.xlu1 %1763, %v44_v34   ;;  %v2025_v36 = vpop.permute.xlu0 %282  ;;  %374 = vperm.xlu0 %1779, %v2022_v35  }
  0x8a   :  { %v79_v37 = vpop.permute.xlu1 %78 }
  0x8b   :  { %v228_v13 = vmul.f32 %v2082_v4, %v79_v37  ;;  %v391_v37 = vmul.f32 %v2080_v1, %v2008_v31 }
  0x8d   :  { %1764 = vset.pattern.permute.xlu1 %v1816_v2  ;;  %378 = vperm.xlu0 %1779, %v2031_v38  }
  0x8e   :  { %322 = vperm.xlu1 %1764, %v44_v34   ;;  %v459_v39 = vpop.permute.xlu0 %458 }
  0x8f   :  { %v271_v40 = vpop.permute.xlu1 %270  ;;  %v586_v21 = vmul.f32 %v2084_v5, %v459_v39  ;;  %v395_v39 = vmul.f32 %v2080_v1, %v2025_v36 }
  0x90   :  { %v392_v10 = vmul.f32 %v2080_v1, %v271_v40 }
  0x91   :  { %1784 = vset.pattern.permute.xlu0 %v1818_v8 }
  0x92   :  { %326 = vperm.xlu1 %1764, %v1911_v14   ;;  %v2037_v41 = vpop.permute.xlu0 %470  ;;  %566 = vperm.xlu0 %1784, %v1976_v25   ;;  %v424_v22 = vadd.f32 %v392_v10, %v228_v13 }
  0x93   :  { %v589_v31 = vmul.f32 %v2084_v5, %v2037_v41 }
  0x94   :  { %v455_v42 = vpop.permute.xlu1 %454 }
  0x95   :  { %v585_v14 = vmul.f32 %v2084_v5, %v455_v42  ;;  %v2110_v42 = vld [vmem:[%s2449_s2] ss:$0 sm:$0xff] }
  0x96   :  { %1765 = vset.pattern.permute.xlu1 %v1817_v7  ;;  %v2049_v45 = vpop.permute.xlu0 %482  ;;  %578 = vperm.xlu0 %1784, %v2046_v44  }
  0x97   :  { %158 = vperm.xlu1 %1765, %v47_v43   ;;  %v592_v60 = vmul.f32 %v2084_v5, %v2049_v45 }
  0x98   :  { %v2052_v46 = vpop.permute.xlu1 %462 }
  0x9a   :  { %v2054_v47 = vpop.permute.xlu0 %490 }
  0x9b   :  { %1766 = vset.pattern.permute.xlu1 %v1816_v2 }
  0x9c   :  { %334 = vperm.xlu1 %1766, %v47_v43   ;;  %v467_v48 = vpop.permute.xlu1 %466 }
  0x9e   :  { %v2057_v49 = vpop.permute.xlu0 %502 }
  0xa0   :  { %1767 = vset.pattern.permute.xlu1 %v1818_v8 }
  0xa1   :  { %518 = vperm.xlu1 %1767, %v44_v34   ;;  %v89_v50 = vpop.permute.xlu1 %88 }
  0xa2   :  { %v2060_v51 = vpop.permute.xlu0 %514  ;;  %v230_v30 = vmul.f32 %v2082_v4, %v89_v50 }
  0xa4   :  { %v426_v61 = vadd.f32 %v394_v27, %v230_v30 }
  0xa5   :  { %526 = vperm.xlu1 %1767, %v1961_v23  }
  0xa6   :  { %v2063_v52 = vpop.permute.xlu1 %274  ;;  %v2065_v53 = vpop.permute.xlu0 %522 }
  0xa7   :  { %v393_v10 = vmul.f32 %v2080_v1, %v2063_v52 }
  0xa9   :  { %530 = vperm.xlu1 %1767, %v47_v43  }
  0xaa   :  { %v2067_v55 = vpop.permute.xlu0 %534 }
  0xab   :  { %v94_v56 = vpop.permute.xlu1 %93 }
  0xac   :  { %v231_v43 = vmul.f32 %v2082_v4, %v94_v56  ;;  %v587_v56 = vmul.f32 %v2084_v5, %v2052_v46 }
  0xad   :  { %1768 = vset.pattern.permute.xlu1 %v1817_v7 }
  0xae   :  { %168 = vperm.xlu1 %1768, %v1996_v28   ;;  %v2071_v58 = vpop.permute.xlu0 %546  ;;  %v427_v45 = vadd.f32 %v395_v39, %v231_v43 }
  0xaf   :  { %v99_v59 = vpop.permute.xlu1 %98 }
  0xb0   :  { %v232_v62 = vmul.f32 %v2082_v4, %v99_v59 }
  0xb2   :  { %1769 = vset.pattern.permute.xlu1 %v1816_v2  ;;  %v2077_v0 = vpop.permute.xlu0 %554 }
  0xb3   :  { %338 = vperm.xlu1 %1769, %v1918_v15   ;;  %v588_v15 = vmul.f32 %v2084_v5, %v467_v48 }
  0xb4   :  { %v287_v3 = vpop.permute.xlu1 %286 }
  0xb5   :  { %v620_v40 = vadd.f32 %v588_v15, %v424_v22  ;;  %v396_v33 = vmul.f32 %v2080_v1, %v287_v3 }
  0xb7   :  { %v64_v6 = vpop.permute.xlu0 %63  ;;  %1770 = vset.pattern.permute.xlu1 %v1817_v7  ;;  %v659_v41 = vadd.f32 %v2110_v42, %v620_v40 }
  0xb8   :  { %v225_v11 = vmul.f32 %v2082_v4, %v64_v6  ;;  %173 = vperm.xlu1 %1770, %v2003_v29  }
  0xb9   :  { %v475_v12 = vpop.permute.xlu1 %474  ;;  %v691_v52 = vmax.f32 %v659_v41, 0.0 }
  0xba   :  { %v421_v18 = vadd.f32 %v389_v9, %v225_v11  ;;  %v590_v48 = vmul.f32 %v2084_v5, %v475_v12  ;;  %v428_v11 = vadd.f32 %v396_v33, %v232_v62  ;;  %v594_v62 = vmul.f32 %v2084_v5, %v2054_v47 }
  0xbb   :  { %v69_v20 = vpop.permute.xlu0 %68 }
  0xbc   :  { %v617_v23 = vadd.f32 %v585_v14, %v421_v18  ;;  %v226_v26 = vmul.f32 %v2082_v4, %v69_v20  ;;  %178 = vperm.xlu1 %1770, %v1925_v16   ;;  %v622_v12 = vadd.f32 %v590_v48, %v426_v61  ;;  %v52_v48 = vld [vmem:[%s2447_s0 + $0xc0] sm:$0xff] }
  0xbd   :  { %v479_v34 = vpop.permute.xlu1 %478 }
  0xbe   :  { %v422_v32 = vadd.f32 %v390_v19, %v226_v26  ;;  %v656_v36 = vadd.f32 %v2110_v42, %v617_v23  ;;  %v591_v63 = vmul.f32 %v2084_v5, %v479_v34  ;;  %v624_v23 = vadd.f32 %v592_v60, %v428_v11 }
  0xbf   :  { %v74_v50 = vpop.permute.xlu0 %73  ;;  %v661_v26 = vadd.f32 %v2110_v42, %v622_v12  ;;  %v55_v12 = vld [vmem:[%s2447_s0 + $0xd8] sm:$0xff] }
  0xc0   :  { %v618_v54 = vadd.f32 %v586_v21, %v422_v32  ;;  %v227_v57 = vmul.f32 %v2082_v4, %v74_v50  ;;  %1771 = vset.pattern.permute.xlu1 %v1816_v2  ;;  %v688_v14 = vmax.f32 %v656_v36, 0.0  ;;  %v623_v15 = vadd.f32 %v591_v63, %v427_v45 }
  0xc1   :  { %350 = vperm.xlu1 %1771, %v1925_v16   ;;  %v663_v39 = vadd.f32 %v2110_v42, %v624_v23  ;;  %v693_v43 = vmax.f32 %v661_v26, 0.0 }
  0xc2   :  { %v423_v3 = vadd.f32 %v391_v37, %v227_v57  ;;  %v104_v6 = vpop.permute.xlu1 %103  ;;  %v657_v9 = vadd.f32 %v2110_v42, %v618_v54  ;;  %v662_v34 = vadd.f32 %v2110_v42, %v623_v15 }
  0xc3   :  { %v84_v46 = vpop.permute.xlu0 %83 }
  0xc4   :  { %v619_v13 = vadd.f32 %v587_v56, %v423_v3  ;;  %v229_v59 = vmul.f32 %v2082_v4, %v84_v46  ;;  %v689_v16 = vmax.f32 %v657_v9, 0.0  ;;  %v694_v50 = vmax.f32 %v662_v34, 0.0 }
  0xc5   :  { %1772 = vset.pattern.permute.xlu1 %v1818_v8 }
  0xc6   :  { %v658_v18 = vadd.f32 %v2110_v42, %v619_v13  ;;  %v425_v19 = vadd.f32 %v393_v10, %v229_v59  ;;  %538 = vperm.xlu1 %1772, %v1996_v28   ;;  %v720_v20 = vpack.c.bf16 %v689_v16, %v688_v14  ;;  %v233_v10 = vmul.f32 %v2082_v4, %v104_v6 }
  0xc7   :  { %v291_v21 = vpop.permute.xlu1 %290  ;;  %v109_v22 = vpop.permute.xlu0 %108 }
  0xc8   :  { %v690_v27 = vmax.f32 %v658_v18, 0.0  ;;  %v621_v30 = vadd.f32 %v589_v31, %v425_v19  ;;  %1664 = vmatprep.mubr.msk.bf16.mxu0 %vm759_vm0, %v720_v20  ;;  %v234_v36 = vmul.f32 %v2082_v4, %v109_v22  ;;  %v397_v3 = vmul.f32 %v2080_v1, %v291_v21 }
  0xca   :  { %v660_v37 = vadd.f32 %v2110_v42, %v621_v30  ;;  %542 = vperm.xlu1 %1772, %v2003_v29   ;;  %v721_v40 = vpack.c.bf16 %v691_v52, %v690_v27  ;;  %v695_v29 = vmax.f32 %v663_v39, 0.0  ;;  %v429_v46 = vadd.f32 %v397_v3, %v233_v10 }
  0xcb   :  { %v295_v32 = vpop.permute.xlu1 %294  ;;  %v114_v28 = vpop.permute.xlu0 %113 }
  0xcc   :  { %v692_v33 = vmax.f32 %v660_v37, 0.0  ;;  %1665 = vmatmul.mubr.msk.bf16.vlgmr.msra.gmra.mrb[0].mxu0 %vm759_vm0, %v721_v40  ;;  %v398_v60 = vmul.f32 %v2080_v1, %v295_v32  ;;  %v723_v56 = vpack.c.bf16 %v695_v29, %v694_v50  ;;  %v235_v30 = vmul.f32 %v2082_v4, %v114_v28 }
  0xce   :  { %1773 = vset.pattern.permute.xlu1 %v1817_v7  ;;  %v722_v31 = vpack.c.bf16 %v693_v43, %v692_v33  ;;  %v430_v41 = vadd.f32 %v398_v60, %v234_v36 }
  0xcf   :  { %183 = vperm.xlu1 %1773, %v52_v48   ;;  %v2146_v54 = vpop.permute.xlu0 %123 }
  0xd0   :  { %1668 = vmatprep.mubr.msk.bf16.mxu0 %vm759_vm0, %v722_v31  ;;  %v119_v57 = vpop.permute.xlu1 %118  ;;  %v626_v45 = vadd.f32 %v594_v62, %v430_v41  ;;  %v237_v36 = vmul.f32 %v2082_v4, %v2146_v54  ;;  %v597_v41 = vmul.f32 %v2084_v5, %v2057_v49 }
  0xd1   :  { %v236_v26 = vmul.f32 %v2082_v4, %v119_v57 }
  0xd2   :  { %v665_v59 = vadd.f32 %v2110_v42, %v626_v45 }
  0xd3   :  { %1774 = vset.pattern.permute.xlu1 %v1816_v2  ;;  %v2152_v61 = vpop.permute.xlu0 %148 }
  0xd4   :  { %354 = vperm.xlu1 %1774, %v52_v48   ;;  %1669 = vmatmul.mubr.msk.bf16.gmra.mrb[4].mxu0 %vm759_vm0, %v723_v56  ;;  %v697_v15 = vmax.f32 %v665_v59, 0.0 }
  0xd5   :  { %v303_v63 = vpop.permute.xlu1 %302 }
  0xd6   :  { %v400_v21 = vmul.f32 %v2080_v1, %v303_v63 }
  0xd7   :  { %v2158_v9 = vpop.permute.xlu0 %153 }
  0xd8   :  { %358 = vperm.xlu1 %1774, %v1931_v17   ;;  %v432_v34 = vadd.f32 %v400_v21, %v236_v26 }
  0xda   :  { %v487_v11 = vpop.permute.xlu1 %486 }
  0xdb   :  { %v593_v13 = vmul.f32 %v2084_v5, %v487_v11  ;;  %v2166_v47 = vpop.permute.xlu0 %163 }
  0xdc   :  { %1775 = vset.pattern.permute.xlu1 %v1817_v7 }
  0xdd   :  { %v625_v14 = vadd.f32 %v593_v13, %v429_v46  ;;  %198 = vperm.xlu1 %1775, %v55_v12  }
  0xde   :  { %v495_v17 = vpop.permute.xlu1 %494 }
  0xdf   :  { %v664_v6 = vadd.f32 %v2110_v42, %v625_v14  ;;  %v2171_v16 = vpop.permute.xlu0 %188  ;;  %v595_v43 = vmul.f32 %v2084_v5, %v495_v17 }
  0xe1   :  { %v696_v18 = vmax.f32 %v664_v6, 0.0  ;;  %1776 = vset.pattern.permute.xlu1 %v1816_v2 }
  0xe2   :  { %366 = vperm.xlu1 %1776, %v55_v12   ;;  %v499_v19 = vpop.permute.xlu1 %498 }
  0xe3   :  { %v724_v20 = vpack.c.bf16 %v697_v15, %v696_v18  ;;  %v2174_v52 = vpop.permute.xlu0 %193  ;;  %v596_v27 = vmul.f32 %v2084_v5, %v499_v19 }
  0xe5   :  { %1672 = vmatprep.mubr.msk.bf16.mxu0 %vm759_vm0, %v724_v20  ;;  %v628_v32 = vadd.f32 %v596_v27, %v432_v34 }
  0xe6   :  { %1777 = vset.pattern.permute.xlu1 %v1818_v8 }
  0xe7   :  { %550 = vperm.xlu1 %1777, %v52_v48   ;;  %v129_v22 = vpop.permute.xlu1 %128  ;;  %v2179_v23 = vpop.permute.xlu0 %203  ;;  %v667_v48 = vadd.f32 %v2110_v42, %v628_v32 }
  0xeb   :  { %558 = vperm.xlu1 %1777, %v1970_v24   ;;  %v699_v24 = vmax.f32 %v667_v48, 0.0 }
  0xec   :  { %v299_v37 = vpop.permute.xlu0 %298  ;;  %v307_v40 = vpop.permute.xlu1 %306 }
  0xed   :  { %v399_v39 = vmul.f32 %v2080_v1, %v299_v37  ;;  %v401_v60 = vmul.f32 %v2080_v1, %v307_v40 }
  0xef   :  { %v431_v33 = vadd.f32 %v399_v39, %v235_v30  ;;  %562 = vperm.xlu1 %1777, %v55_v12   ;;  %v433_v63 = vadd.f32 %v401_v60, %v237_v36  ;;  %v600_v12 = vmul.f32 %v2084_v5, %v2060_v51 }
  0xf0   :  { %v311_v56 = vpop.permute.xlu0 %310 }
  0xf1   :  { %v627_v50 = vadd.f32 %v595_v43, %v431_v33  ;;  %v134_v31 = vpop.permute.xlu1 %133  ;;  %v402_v45 = vmul.f32 %v2080_v1, %v311_v56  ;;  %v629_v46 = vadd.f32 %v597_v41, %v433_v63  ;;  %v1790_v41 = vld [vmem:[%s2452_s5 + $0x10] sm:$0xff]  }
  0xf2   :  { %v239_v15 = vmul.f32 %v2082_v4, %v134_v31 }
  0xf3   :  { %v666_v29 = vadd.f32 %v2110_v42, %v627_v50  ;;  %1780 = vset.pattern.permute.xlu1 %v1817_v7  ;;  %v668_v6 = vadd.f32 %v2110_v42, %v629_v46  ;;  %v602_v50 = vmul.f32 %v2084_v5, %v2065_v53  ;;  %v243_v53 = vmul.f32 %v2082_v4, %v2158_v9 }
  0xf4   :  { %208 = vperm.xlu1 %1780, %v2022_v35   ;;  %v315_v11 = vpop.permute.xlu0 %314 }
  0xf5   :  { %v698_v28 = vmax.f32 %v666_v29, 0.0  ;;  %v139_v57 = vpop.permute.xlu1 %138  ;;  %v403_v14 = vmul.f32 %v2080_v1, %v315_v11 }
  0xf6   :  { %v240_v54 = vmul.f32 %v2082_v4, %v139_v57 }
  0xf7   :  { %v725_v62 = vpack.c.bf16 %v699_v24, %v698_v28  ;;  %v435_v19 = vadd.f32 %v403_v14, %v239_v15  ;;  %v1789_v24 = vld [vmem:[%s2452_s5 + $0x8] sm:$0xff]  }
  0xf8   :  { %1781 = vset.pattern.permute.xlu1 %v1816_v2 }
  0xf9   :  { %370 = vperm.xlu1 %1781, %v1976_v25   ;;  %1673 = vmatmul.mubr.msk.bf16.gmra.mrb[8].mxu0 %vm759_vm0, %v725_v62  ;;  %v238_v25 = vmul.f32 %v2082_v4, %v129_v22  ;;  %v700_v22 = vmax.f32 %v668_v6, 0.0 }
  0xfa   :  { %v319_v3 = vpop.permute.xlu1 %318 }
  0xfb   :  { %v404_v10 = vmul.f32 %v2080_v1, %v319_v3  ;;  %v434_v59 = vadd.f32 %v402_v45, %v238_v25 }
  0xfd   :  { %1782 = vset.pattern.permute.xlu1 %v1817_v7  ;;  %v436_v13 = vadd.f32 %v404_v10, %v240_v54 }
  0xfe   :  { %213 = vperm.xlu1 %1782, %v2031_v38  }
  0xff   :  { %v507_v49 = vpop.permute.xlu1 %506  ;;  %v632_v7 = vadd.f32 %v600_v12, %v436_v13  ;;  %v1791_v12 = vld [vmem:[%s2452_s5 + $0x18] sm:$0xff]  }
 0x100   :  { %v598_v17 = vmul.f32 %v2084_v5, %v507_v49 }
 0x101   :  { %v671_v26 = vadd.f32 %v2110_v42, %v632_v7 }
 0x102   :  { %v630_v18 = vadd.f32 %v598_v17, %v434_v59  ;;  %218 = vperm.xlu1 %1782, %v2046_v44  }
 0x103   :  { %v511_v51 = vpop.permute.xlu1 %510  ;;  %v703_v32 = vmax.f32 %v671_v26, 0.0  ;;  %v245_v26 = vmul.f32 %v2082_v4, %v2166_v47 }
 0x104   :  { %v669_v20 = vadd.f32 %v2110_v42, %v630_v18  ;;  %v599_v21 = vmul.f32 %v2084_v5, %v511_v51 }
 0x106   :  { %v701_v27 = vmax.f32 %v669_v20, 0.0  ;;  %v631_v30 = vadd.f32 %v599_v21, %v435_v19  ;;  %1783 = vset.pattern.permute.xlu1 %v1816_v2  ;;  %v242_v2 = vmul.f32 %v2082_v4, %v2152_v61 }
 0x107   :  { %382 = vperm.xlu1 %1783, %v2046_v44  }
 0x108   :  { %v726_v34 = vpack.c.bf16 %v701_v27, %v700_v22  ;;  %v670_v37 = vadd.f32 %v2110_v42, %v631_v30  ;;  %v144_v40 = vpop.permute.xlu1 %143  ;;  %v605_v30 = vmul.f32 %v2084_v5, %v2067_v55 }
 0x109   :  { %v241_v57 = vmul.f32 %v2082_v4, %v144_v40 }
 0x10a   :  { %v702_v39 = vmax.f32 %v670_v37, 0.0  ;;  %1676 = vmatprep.mubr.msk.bf16.mxu0 %vm759_vm0, %v726_v34 }
 0x10b   :  { %1785 = vset.pattern.permute.xlu1 %v1818_v8 }
 0x10c   :  { %v727_v43 = vpack.c.bf16 %v703_v32, %v702_v39  ;;  %570 = vperm.xlu1 %1785, %v2022_v35   ;;  %v1788_v35 = vld [vmem:[%s2452_s5] sm:$0xff]  }
 0x10d   :  { %v323_v33 = vpop.permute.xlu1 %322  ;;  %1696 = vmatprep.subr.bf16.mxu1 %v1788_v35 }
 0x10e   :  { %1677 = vmatmul.mubr.msk.bf16.gmra.mrb[12].mxu0 %vm759_vm0, %v727_v43  ;;  %1697 = vmatpush3.bf16.msra.mxu1 %v1788_v35  ;;  %v405_v28 = vmul.f32 %v2080_v1, %v323_v33 }
 0x10f   :  { %1698 = vmatprep.subr.bf16.mxu1 %v1789_v24 }
 0x110   :  { %574 = vperm.xlu1 %1785, %v2031_v38   ;;  %v331_v38 = vpop.permute.xlu0 %330  ;;  %v437_v56 = vadd.f32 %v405_v28, %v241_v57 }
 0x111   :  { %v327_v44 = vpop.permute.xlu1 %326  ;;  %v407_v36 = vmul.f32 %v2080_v1, %v331_v38 }
 0x112   :  { %v406_v48 = vmul.f32 %v2080_v1, %v327_v44  ;;  %1699 = vmatpush3.bf16.msra.mxu1 %v1789_v24 }
 0x113   :  { %v439_v10 = vadd.f32 %v407_v36, %v243_v53  ;;  %1700 = vmatprep.subr.bf16.mxu1 %v1790_v41 }
 0x114   :  { %v438_v31 = vadd.f32 %v406_v48, %v242_v2  ;;  %v343_v39 = vpop.permute.xlu0 %342 }
 0x115   :  { %v410_v2 = vmul.f32 %v2080_v1, %v343_v39 }
 0x116   :  { %v634_v29 = vadd.f32 %v602_v50, %v438_v31  ;;  %v159_v8 = vpop.permute.xlu1 %158  ;;  %1701 = vmatpush3.bf16.msra.mxu1 %v1790_v41  ;;  %v608_v50 = vmul.f32 %v2084_v5, %v2071_v58 }
 0x117   :  { %v244_v46 = vmul.f32 %v2082_v4, %v159_v8  ;;  %1702 = vmatprep.subr.bf16.mxu1 %v1791_v12 }
 0x118   :  { %v673_v63 = vadd.f32 %v2110_v42, %v634_v29  ;;  %v347_v31 = vpop.permute.xlu0 %346 }
 0x119   :  { %v411_v29 = vmul.f32 %v2080_v1, %v347_v31 }
 0x11a   :  { %v705_v25 = vmax.f32 %v673_v63, 0.0  ;;  %1703 = vmatpush3.bf16.msra.mxu1 %v1791_v12 }
 0x11b   :  { %v335_v61 = vpop.permute.xlu1 %334 }
 0x11c   :  { %v408_v9 = vmul.f32 %v2080_v1, %v335_v61 }
 0x11e   :  { %v440_v14 = vadd.f32 %v408_v9, %v244_v46 }
 0x120   :  { %v519_v60 = vpop.permute.xlu1 %518 }
 0x121   :  { %v601_v62 = vmul.f32 %v2084_v5, %v519_v60 }
 0x123   :  { %v633_v3 = vadd.f32 %v601_v62, %v437_v56 }
 0x124   :  { %v527_v45 = vpop.permute.xlu1 %526 }
 0x125   :  { %v672_v54 = vadd.f32 %v2110_v42, %v633_v3  ;;  %v603_v11 = vmul.f32 %v2084_v5, %v527_v45 }
 0x127   :  { %v704_v13 = vmax.f32 %v672_v54, 0.0  ;;  %v635_v49 = vadd.f32 %v603_v11, %v439_v10 }
 0x128   :  { %v531_v59 = vpop.permute.xlu1 %530 }
 0x129   :  { %v728_v17 = vpack.c.bf16 %v705_v25, %v704_v13  ;;  %v604_v6 = vmul.f32 %v2084_v5, %v531_v59  ;;  %v674_v15 = vadd.f32 %v2110_v42, %v635_v49  ;;  %v250_v25 = vmul.f32 %v2082_v4, %v2171_v16 }
 0x12a   :  { %v610_v13 = vmul.f32 %v2084_v5, %v2077_v0 }
 0x12b   :  { %v636_v7 = vadd.f32 %v604_v6, %v440_v14  ;;  %1680 = vmatprep.mubr.msk.bf16.mxu0 %vm759_vm0, %v728_v17  ;;  %v706_v19 = vmax.f32 %v674_v15, 0.0  ;;  %v363_v15 = vpop.permute.xlu0 %362 }
 0x12c   :  { %v415_v16 = vmul.f32 %v2080_v1, %v363_v15 }
 0x12d   :  { %v675_v18 = vadd.f32 %v2110_v42, %v636_v7  ;;  %v169_v51 = vpop.permute.xlu1 %168 }
 0x12e   :  { %v246_v44 = vmul.f32 %v2082_v4, %v169_v51  ;;  %v251_v51 = vmul.f32 %v2082_v4, %v2174_v52 }
 0x12f   :  { %v707_v20 = vmax.f32 %v675_v18, 0.0 }
 0x130   :  { %v442_v8 = vadd.f32 %v410_v2, %v246_v44 }
 0x131   :  { %v729_v21 = vpack.c.bf16 %v707_v20, %v706_v19 }
 0x132   :  { %v339_v22 = vpop.permute.xlu1 %338 }
 0x133   :  { %v409_v27 = vmul.f32 %v2080_v1, %v339_v22  ;;  %1681 = vmatmul.mubr.msk.bf16.gmra.mrb[16].mxu0 %vm759_vm0, %v729_v21 }
 0x135   :  { %v441_v34 = vadd.f32 %v409_v27, %v245_v26  ;;  %v447_v26 = vadd.f32 %v415_v16, %v251_v51 }
 0x137   :  { %v637_v37 = vadd.f32 %v605_v30, %v441_v34  ;;  %v174_v40 = vpop.permute.xlu1 %173 }
 0x138   :  { %v247_v35 = vmul.f32 %v2082_v4, %v174_v40 }
 0x139   :  { %v676_v61 = vadd.f32 %v2110_v42, %v637_v37 }
 0x13a   :  { %v443_v57 = vadd.f32 %v411_v29, %v247_v35  ;;  %v375_v35 = vpop.permute.xlu0 %374 }
 0x13b   :  { %v179_v32 = vpop.permute.xlu1 %178  ;;  %v708_v58 = vmax.f32 %v676_v61, 0.0 }
 0x13c   :  { %v248_v47 = vmul.f32 %v2082_v4, %v179_v32 }
 0x13e   :  { %v379_v61 = vpop.permute.xlu0 %378 }
 0x140   :  { %v351_v43 = vpop.permute.xlu1 %350 }
 0x141   :  { %v412_v33 = vmul.f32 %v2080_v1, %v351_v43 }
 0x143   :  { %v444_v48 = vadd.f32 %v412_v33, %v248_v47 }
 0x145   :  { %v539_v55 = vpop.permute.xlu1 %538  ;;  %v640_v38 = vadd.f32 %v608_v50, %v444_v48 }
 0x146   :  { %v606_v24 = vmul.f32 %v2084_v5, %v539_v55 }
 0x147   :  { %v679_v56 = vadd.f32 %v2110_v42, %v640_v38 }
 0x148   :  { %v638_v28 = vadd.f32 %v606_v24, %v442_v8 }
 0x149   :  { %v543_v53 = vpop.permute.xlu1 %542  ;;  %v711_v45 = vmax.f32 %v679_v56, 0.0 }
 0x14a   :  { %v677_v36 = vadd.f32 %v2110_v42, %v638_v28  ;;  %v607_v60 = vmul.f32 %v2084_v5, %v543_v53  ;;  %v567_v53 = vpop.permute.xlu0 %566 }
 0x14c   :  { %v709_v62 = vmax.f32 %v677_v36, 0.0  ;;  %v639_v41 = vadd.f32 %v607_v60, %v443_v57  ;;  %v253_v57 = vmul.f32 %v2082_v4, %v2179_v23  ;;  %v613_v60 = vmul.f32 %v2084_v5, %v567_v53 }
 0x14e   :  { %v730_v63 = vpack.c.bf16 %v709_v62, %v708_v58  ;;  %v678_v3 = vadd.f32 %v2110_v42, %v639_v41  ;;  %v184_v10 = vpop.permute.xlu1 %183  ;;  %v579_v62 = vpop.permute.xlu0 %578 }
 0x14f   :  { %v249_v7 = vmul.f32 %v2082_v4, %v184_v10 }
 0x150   :  { %v710_v9 = vmax.f32 %v678_v3, 0.0  ;;  %1684 = vmatprep.mubr.msk.bf16.mxu0 %vm759_vm0, %v730_v63  ;;  %v418_v3 = vmul.f32 %v2080_v1, %v375_v35 }
 0x152   :  { %v731_v54 = vpack.c.bf16 %v711_v45, %v710_v9  ;;  %v616_v9 = vmul.f32 %v2084_v5, %v579_v62 }
 0x153   :  { %v355_v11 = vpop.permute.xlu1 %354 }
 0x154   :  { %1685 = vmatmul.mubr.msk.bf16.gmra.mrb[20].mxu0 %vm759_vm0, %v731_v54  ;;  %v413_v6 = vmul.f32 %v2080_v1, %v355_v11 }
 0x156   :  { %v445_v19 = vadd.f32 %v413_v6, %v249_v7 }
 0x157   :  { %v359_v12 = vpop.permute.xlu1 %358 }
 0x158   :  { %v414_v46 = vmul.f32 %v2080_v1, %v359_v12 }
 0x15a   :  { %v446_v49 = vadd.f32 %v414_v46, %v250_v25  ;;  %v419_v25 = vmul.f32 %v2080_v1, %v379_v61 }
 0x15c   :  { %v642_v59 = vadd.f32 %v610_v13, %v446_v49  ;;  %v199_v14 = vpop.permute.xlu1 %198 }
 0x15d   :  { %v252_v40 = vmul.f32 %v2082_v4, %v199_v14 }
 0x15e   :  { %v681_v0 = vadd.f32 %v2110_v42, %v642_v59 }
 0x160   :  { %v713_v37 = vmax.f32 %v681_v0, 0.0  ;;  %v2320_v0 = vld [vmem:[%s2451_s4] ss:$0 sm:$0xff] }
 0x161   :  { %v367_v17 = vpop.permute.xlu1 %366 }
 0x162   :  { %v416_v27 = vmul.f32 %v2080_v1, %v367_v17 }
 0x164   :  { %v448_v43 = vadd.f32 %v416_v27, %v252_v40 }
 0x166   :  { %v551_v18 = vpop.permute.xlu1 %550 }
 0x167   :  { %v609_v20 = vmul.f32 %v2084_v5, %v551_v18 }
 0x169   :  { %v641_v21 = vadd.f32 %v609_v20, %v445_v19 }
 0x16a   :  { %v559_v22 = vpop.permute.xlu1 %558 }
 0x16b   :  { %v680_v30 = vadd.f32 %v2110_v42, %v641_v21  ;;  %v611_v34 = vmul.f32 %v2084_v5, %v559_v22 }
 0x16d   :  { %v712_v52 = vmax.f32 %v680_v30, 0.0  ;;  %v643_v32 = vadd.f32 %v611_v34, %v447_v26 }
 0x16e   :  { %v563_v39 = vpop.permute.xlu1 %562 }
 0x16f   :  { %v732_v33 = vpack.c.bf16 %v713_v37, %v712_v52  ;;  %v612_v2 = vmul.f32 %v2084_v5, %v563_v39  ;;  %v682_v44 = vadd.f32 %v2110_v42, %v643_v32 }
 0x171   :  { %v644_v47 = vadd.f32 %v612_v2, %v448_v43  ;;  %1688 = vmatprep.mubr.msk.bf16.mxu0 %vm759_vm0, %v732_v33  ;;  %v714_v31 = vmax.f32 %v682_v44, 0.0 }
 0x173   :  { %v683_v48 = vadd.f32 %v2110_v42, %v644_v47  ;;  %v209_v50 = vpop.permute.xlu1 %208 }
 0x174   :  { %v254_v41 = vmul.f32 %v2082_v4, %v209_v50 }
 0x175   :  { %v715_v55 = vmax.f32 %v683_v48, 0.0 }
 0x176   :  { %v450_v11 = vadd.f32 %v418_v3, %v254_v41 }
 0x177   :  { %v733_v29 = vpack.c.bf16 %v715_v55, %v714_v31 }
 0x178   :  { %v371_v8 = vpop.permute.xlu1 %370 }
 0x179   :  { %1689 = vmatmul.mubr.msk.bf16.gmra.mrb[24].mxu0 %vm759_vm0, %v733_v29  ;;  %v417_v28 = vmul.f32 %v2080_v1, %v371_v8 }
 0x17b   :  { %v449_v36 = vadd.f32 %v417_v28, %v253_v57 }
 0x17d   :  { %v214_v24 = vpop.permute.xlu1 %213  ;;  %v645_v10 = vadd.f32 %v613_v60, %v449_v36 }
 0x17e   :  { %v255_v23 = vmul.f32 %v2082_v4, %v214_v24 }
 0x17f   :  { %v684_v46 = vadd.f32 %v2110_v42, %v645_v10 }
 0x180   :  { %v451_v14 = vadd.f32 %v419_v25, %v255_v23 }
 0x181   :  { %v219_v38 = vpop.permute.xlu1 %218  ;;  %v716_v15 = vmax.f32 %v684_v46, 0.0 }
 0x182   :  { %v256_v63 = vmul.f32 %v2082_v4, %v219_v38 }
 0x186   :  { %v383_v58 = vpop.permute.xlu1 %382 }
 0x187   :  { %v420_v56 = vmul.f32 %v2080_v1, %v383_v58 }
 0x189   :  { %v452_v45 = vadd.f32 %v420_v56, %v256_v63 }
 0x18b   :  { %v571_v54 = vpop.permute.xlu1 %570  ;;  %v648_v13 = vadd.f32 %v616_v9, %v452_v45 }
 0x18c   :  { %v614_v12 = vmul.f32 %v2084_v5, %v571_v54 }
 0x18d   :  { %v687_v7 = vadd.f32 %v2110_v42, %v648_v13 }
 0x18e   :  { %v646_v49 = vadd.f32 %v614_v12, %v450_v11 }
 0x18f   :  { %v575_v59 = vpop.permute.xlu1 %574  ;;  %v719_v19 = vmax.f32 %v687_v7, 0.0 }
 0x190   :  { %v685_v17 = vadd.f32 %v2110_v42, %v646_v49  ;;  %v615_v6 = vmul.f32 %v2084_v5, %v575_v59 }
 0x192   :  { %v717_v18 = vmax.f32 %v685_v17, 0.0  ;;  %v647_v51 = vadd.f32 %v615_v6, %v451_v14 }
 0x194   :  { %v734_v4 = vpack.c.bf16 %v717_v18, %v716_v15  ;;  %v686_v16 = vadd.f32 %v2110_v42, %v647_v51 }
 0x196   :  { %v718_v1 = vmax.f32 %v686_v16, 0.0  ;;  %1692 = vmatprep.mubr.msk.bf16.mxu0 %vm759_vm0, %v734_v4 }
 0x198   :  { %v735_v20 = vpack.c.bf16 %v719_v19, %v718_v1 }
 0x19a   :  { %1693 = vmatmul.mubr.msk.bf16.gmra.mrb[28].mxu0 %vm759_vm0, %v735_v20 }
 0x19f   :  { %v1666_v5 = vpop.f32.mrb[0].mxu0 }
 0x1a0   :  { %v851_v21 = vadd.f32 %v1666_v5, %v2320_v0  ;;  %v842_v22 = vpop.f32.mrb[1].mxu0 }
 0x1a1   :  { %v843_v26 = vadd.f32 %v2320_v0, %v842_v22  ;;  %v1667_v27 = vpop.f32.mrb[2].mxu0 }
 0x1a2   :  { %v854_v42 = vadd.f32 %v1667_v27, %v2320_v0  ;;  %v845_v30 = vpop.f32.mrb[3].mxu0  ;;  %v971_v37 = vmax.f32 %v851_v21, 0.0 }
 0x1a3   :  { %v846_v34 = vadd.f32 %v2320_v0, %v845_v30  ;;  %v969_v52 = vmax.f32 %v843_v26, 0.0 }
 0x1a4   :  { %v972_v40 = vmax.f32 %v854_v42, 0.0 }
 0x1a5   :  { %v970_v32 = vmax.f32 %v846_v34, 0.0 }
 0x1a6   :  { %v1002_v39 = vpack.c.bf16 %v972_v40, %v971_v37 }
 0x1a7   :  { %v1670_v43 = vpop.f32.mrb[4].mxu0  ;;  %v1001_v33 = vpack.c.bf16 %v970_v32, %v969_v52 }
 0x1a8   :  { %v867_v2 = vadd.f32 %v1670_v43, %v2320_v0  ;;  %v858_v44 = vpop.f32.mrb[5].mxu0 }
 0x1a9   :  { %v859_v47 = vadd.f32 %v2320_v0, %v858_v44  ;;  %v1671_v48 = vpop.f32.mrb[6].mxu0  ;;  %1704 = vmatprep.mubr.msk.bf16.mxu1 %vm1056_vm1, %v1001_v33 }
 0x1aa   :  { %v870_v50 = vadd.f32 %v1671_v48, %v2320_v0  ;;  %v861_v31 = vpop.f32.mrb[7].mxu0  ;;  %1705 = vmatmul.mubr.msk.bf16.vlgmr.msra.gmra.mrb[0].mxu1 %vm1056_vm1, %v1002_v39  ;;  %v975_v29 = vmax.f32 %v867_v2, 0.0 }
 0x1ab   :  { %v862_v55 = vadd.f32 %v2320_v0, %v861_v31  ;;  %v973_v35 = vmax.f32 %v859_v47, 0.0 }
 0x1ac   :  { %v976_v8 = vmax.f32 %v870_v50, 0.0 }
 0x1ad   :  { %v974_v24 = vmax.f32 %v862_v55, 0.0 }
 0x1ae   :  { %v1004_v61 = vpack.c.bf16 %v976_v8, %v975_v29 }
 0x1af   :  { %v1003_v38 = vpack.c.bf16 %v974_v24, %v973_v35 }
 0x1b1   :  { %1708 = vmatprep.mubr.msk.bf16.mxu1 %vm1056_vm1, %v1003_v38 }
 0x1b2   :  { %1709 = vmatmul.mubr.msk.bf16.gmra.mrb[4].mxu1 %vm1056_vm1, %v1004_v61 }
 0x1cc   :  { %v1674_v28 = vpop.f32.mrb[8].mxu0 }
 0x1cd   :  { %v883_v53 = vadd.f32 %v1674_v28, %v2320_v0  ;;  %v874_v57 = vpop.f32.mrb[9].mxu0 }
 0x1ce   :  { %v875_v36 = vadd.f32 %v2320_v0, %v874_v57  ;;  %v1675_v60 = vpop.f32.mrb[10].mxu0 }
 0x1cf   :  { %v886_v58 = vadd.f32 %v1675_v60, %v2320_v0  ;;  %v877_v56 = vpop.f32.mrb[11].mxu0  ;;  %v979_v41 = vmax.f32 %v883_v53, 0.0 }
 0x1d0   :  { %v878_v62 = vadd.f32 %v2320_v0, %v877_v56  ;;  %v977_v3 = vmax.f32 %v875_v36, 0.0 }
 0x1d1   :  { %v980_v63 = vmax.f32 %v886_v58, 0.0 }
 0x1d2   :  { %v978_v10 = vmax.f32 %v878_v62, 0.0 }
 0x1d3   :  { %v1006_v45 = vpack.c.bf16 %v980_v63, %v979_v41 }
 0x1d4   :  { %v1005_v9 = vpack.c.bf16 %v978_v10, %v977_v3 }
 0x1d6   :  { %1712 = vmatprep.mubr.msk.bf16.mxu1 %vm1056_vm1, %v1005_v9 }
 0x1d7   :  { %1713 = vmatmul.mubr.msk.bf16.gmra.mrb[8].mxu1 %vm1056_vm1, %v1006_v45 }
 0x1e1   :  { %v1678_v54 = vpop.f32.mrb[12].mxu0 }
 0x1e2   :  { %v899_v11 = vadd.f32 %v1678_v54, %v2320_v0  ;;  %v890_v23 = vpop.f32.mrb[13].mxu0 }
 0x1e3   :  { %v891_v12 = vadd.f32 %v2320_v0, %v890_v23  ;;  %v1679_v25 = vpop.f32.mrb[14].mxu0 }
 0x1e4   :  { %v902_v46 = vadd.f32 %v1679_v25, %v2320_v0  ;;  %v893_v13 = vpop.f32.mrb[15].mxu0  ;;  %v983_v59 = vmax.f32 %v899_v11, 0.0 }
 0x1e5   :  { %v894_v49 = vadd.f32 %v2320_v0, %v893_v13  ;;  %v981_v17 = vmax.f32 %v891_v12, 0.0 }
 0x1e6   :  { %v984_v14 = vmax.f32 %v902_v46, 0.0 }
 0x1e7   :  { %v982_v6 = vmax.f32 %v894_v49, 0.0  ;;  %v2373_v49 = vld [vmem:[%s2453_s6] ss:$0 sm:$0xff]  ;;  %s1819_s6 = smov [#allocation2]  }
 0x1e8   :  { %v1008_v15 = vpack.c.bf16 %v984_v14, %v983_v59  ;;  %s1570_s9 = sshll.u32 %s1819_s6, 4  ;;  %s1571_s9 = int_to_ptr.vmem [resolvable:$true] %s1570_s9 }
 0x1e9   :  { %v1007_v7 = vpack.c.bf16 %v982_v6, %v981_v17  ;;  %s1792_s10 = scalar_lea.vmem %s1571_s9, 512  ;;  %p1797_p1 = scmp.lt.s32.totalorder %s1571_s9, %s1571_s9 }
 0x1ea   :  { %p1793_p0 = scmp.ne.s32.totalorder %s1571_s9, %s1792_s10  ;;  %p1798_p2 = scmp.lt.s32.totalorder %s1792_s10, %s1792_s10 }
 0x1eb   :  { %1716 = vmatprep.mubr.msk.bf16.mxu1 %vm1056_vm1, %v1007_v7 }
 0x1ec   :  { %1717 = vmatmul.mubr.msk.bf16.gmra.mrb[12].mxu1 %vm1056_vm1, %v1008_v15  ;;  %p1799_p3 = por %p1798_p2, %p1797_p1 }
 0x1ee   :  { %p1800_p4 = pnand %p1799_p3, %p1793_p0 }
 0x206   :  { %v1682_v18 = vpop.f32.mrb[16].mxu0 }
 0x207   :  { %v915_v51 = vadd.f32 %v1682_v18, %v2320_v0  ;;  %v906_v4 = vpop.f32.mrb[17].mxu0 }
 0x208   :  { %v907_v16 = vadd.f32 %v2320_v0, %v906_v4  ;;  %v1683_v19 = vpop.f32.mrb[18].mxu0 }
 0x209   :  { %v918_v1 = vadd.f32 %v1683_v19, %v2320_v0  ;;  %v909_v20 = vpop.f32.mrb[19].mxu0  ;;  %v987_v21 = vmax.f32 %v915_v51, 0.0 }
 0x20a   :  { %v910_v5 = vadd.f32 %v2320_v0, %v909_v20  ;;  %v985_v26 = vmax.f32 %v907_v16, 0.0 }
 0x20b   :  { %v988_v22 = vmax.f32 %v918_v1, 0.0 }
 0x20c   :  { %v986_v27 = vmax.f32 %v910_v5, 0.0 }
 0x20d   :  { %v1010_v42 = vpack.c.bf16 %v988_v22, %v987_v21 }
 0x20e   :  { %v1009_v30 = vpack.c.bf16 %v986_v27, %v985_v26 }
 0x210   :  { %1720 = vmatprep.mubr.msk.bf16.mxu1 %vm1056_vm1, %v1009_v30 }
 0x211   :  { %1721 = vmatmul.mubr.msk.bf16.gmra.mrb[16].mxu1 %vm1056_vm1, %v1010_v42 }
 0x227   :  { %v1686_v34 = vpop.f32.mrb[20].mxu0 }
 0x228   :  { %v931_v37 = vadd.f32 %v1686_v34, %v2320_v0  ;;  %v922_v40 = vpop.f32.mrb[21].mxu0 }
 0x229   :  { %v923_v52 = vadd.f32 %v2320_v0, %v922_v40  ;;  %v1687_v32 = vpop.f32.mrb[22].mxu0 }
 0x22a   :  { %v934_v39 = vadd.f32 %v1687_v32, %v2320_v0  ;;  %v925_v43 = vpop.f32.mrb[23].mxu0  ;;  %v991_v2 = vmax.f32 %v931_v37, 0.0 }
 0x22b   :  { %v926_v33 = vadd.f32 %v2320_v0, %v925_v43  ;;  %v989_v47 = vmax.f32 %v923_v52, 0.0 }
 0x22c   :  { %v992_v44 = vmax.f32 %v934_v39, 0.0 }
 0x22d   :  { %v990_v48 = vmax.f32 %v926_v33, 0.0 }
 0x22e   :  { %v1012_v50 = vpack.c.bf16 %v992_v44, %v991_v2 }
 0x22f   :  { %v1011_v31 = vpack.c.bf16 %v990_v48, %v989_v47 }
 0x231   :  { %1724 = vmatprep.mubr.msk.bf16.mxu1 %vm1056_vm1, %v1011_v31 }
 0x232   :  { %1725 = vmatmul.mubr.msk.bf16.gmra.mrb[20].mxu1 %vm1056_vm1, %v1012_v50 }
 0x24c   :  { %v1690_v55 = vpop.f32.mrb[24].mxu0 }
 0x24d   :  { %v947_v29 = vadd.f32 %v1690_v55, %v2320_v0  ;;  %v938_v8 = vpop.f32.mrb[25].mxu0 }
 0x24e   :  { %v939_v35 = vadd.f32 %v2320_v0, %v938_v8  ;;  %v1691_v24 = vpop.f32.mrb[26].mxu0 }
 0x24f   :  { %v950_v61 = vadd.f32 %v1691_v24, %v2320_v0  ;;  %v941_v38 = vpop.f32.mrb[27].mxu0  ;;  %v995_v53 = vmax.f32 %v947_v29, 0.0 }
 0x250   :  { %v942_v28 = vadd.f32 %v2320_v0, %v941_v38  ;;  %v993_v36 = vmax.f32 %v939_v35, 0.0 }
 0x251   :  { %v996_v57 = vmax.f32 %v950_v61, 0.0 }
 0x252   :  { %v994_v60 = vmax.f32 %v942_v28, 0.0 }
 0x253   :  { %v1014_v58 = vpack.c.bf16 %v996_v57, %v995_v53 }
 0x254   :  { %v1013_v56 = vpack.c.bf16 %v994_v60, %v993_v36 }
 0x256   :  { %1728 = vmatprep.mubr.msk.bf16.mxu1 %vm1056_vm1, %v1013_v56 }
 0x257   :  { %1729 = vmatmul.mubr.msk.bf16.gmra.mrb[24].mxu1 %vm1056_vm1, %v1014_v58 }
 0x26d   :  { %v1694_v62 = vpop.f32.mrb[28].mxu0 }
 0x26e   :  { %v963_v41 = vadd.f32 %v1694_v62, %v2320_v0  ;;  %v954_v63 = vpop.f32.mrb[29].mxu0 }
 0x26f   :  { %v955_v3 = vadd.f32 %v2320_v0, %v954_v63  ;;  %v1695_v10 = vpop.f32.mrb[30].mxu0 }
 0x270   :  { %v966_v45 = vadd.f32 %v1695_v10, %v2320_v0  ;;  %v957_v9 = vpop.f32.mrb[31].mxu0  ;;  %v999_v11 = vmax.f32 %v963_v41, 0.0 }
 0x271   :  { %v958_v54 = vadd.f32 %v2320_v0, %v957_v9  ;;  %v997_v12 = vmax.f32 %v955_v3, 0.0 }
 0x272   :  { %v1000_v23 = vmax.f32 %v966_v45, 0.0 }
 0x273   :  { %v998_v25 = vmax.f32 %v958_v54, 0.0 }
 0x274   :  { %v1016_v46 = vpack.c.bf16 %v1000_v23, %v999_v11 }
 0x275   :  { %v1015_v13 = vpack.c.bf16 %v998_v25, %v997_v12 }
 0x277   :  { %1732 = vmatprep.mubr.msk.bf16.mxu1 %vm1056_vm1, %v1015_v13 }
 0x278   :  { %1733 = vmatmul.mubr.msk.bf16.gmra.mrb[28].mxu1 %vm1056_vm1, %v1016_v46 }
 0x27d   :  { %v1706_v59 = vpop.f32.mrb[0].mxu1 }
 0x27e   :  { %v1148_v14 = vadd.f32 %v1706_v59, %v2373_v49  ;;  %v1139_v17 = vpop.f32.mrb[1].mxu1 }
 0x27f   :  { %v1140_v0 = vadd.f32 %v2373_v49, %v1139_v17  ;;  %v1707_v6 = vpop.f32.mrb[2].mxu1 }
 0x280   :  { %v1268_v15 = vmax.f32 %v1148_v14, 0.0  ;;  %v1151_v7 = vadd.f32 %v1707_v6, %v2373_v49  ;;  %v1142_v18 = vpop.f32.mrb[3].mxu1 }
 0x281   :  { %v1266_v51 = vmax.f32 %v1140_v0, 0.0  ;;  %v1143_v4 = vadd.f32 %v2373_v49, %v1142_v18 }
 0x282   :  { %v1310_v16 = vrot.slane %v1268_v15, 4  ;;  %v1269_v19 = vmax.f32 %v1151_v7, 0.0 }
 0x283   :  { %v1298_v1 = vrot.slane %v1266_v51, 4  ;;  %v1267_v20 = vmax.f32 %v1143_v4, 0.0 }
 0x284   :  { %v1311_v5 = vmax.f32 %v1268_v15, %v1310_v16  ;;  %v1316_v21 = vrot.slane %v1269_v19, 4 }
 0x285   :  { %v1299_v22 = vmax.f32 %v1266_v51, %v1298_v1  ;;  %v1304_v26 = vrot.slane %v1267_v20, 4  ;;  %v1710_v27 = vpop.f32.mrb[4].mxu1 }
 0x286   :  { %v1312_v42 = vrot.slane %v1311_v5, 2  ;;  %v1317_v30 = vmax.f32 %v1269_v19, %v1316_v21  ;;  %v1164_v34 = vadd.f32 %v1710_v27, %v2373_v49  ;;  %v1155_v37 = vpop.f32.mrb[5].mxu1 }
 0x287   :  { %v1300_v40 = vrot.slane %v1299_v22, 2  ;;  %v1305_v52 = vmax.f32 %v1267_v20, %v1304_v26  ;;  %v1156_v32 = vadd.f32 %v2373_v49, %v1155_v37  ;;  %v1711_v39 = vpop.f32.mrb[6].mxu1 }
 0x288   :  { %v1313_v43 = vmax.f32 %v1311_v5, %v1312_v42  ;;  %v1318_v33 = vrot.slane %v1317_v30, 2  ;;  %v1272_v2 = vmax.f32 %v1164_v34, 0.0  ;;  %v1167_v44 = vadd.f32 %v1711_v39, %v2373_v49  ;;  %v1158_v47 = vpop.f32.mrb[7].mxu1 }
 0x289   :  { %v1301_v48 = vmax.f32 %v1299_v22, %v1300_v40  ;;  %v1306_v50 = vrot.slane %v1305_v52, 2  ;;  %v1270_v31 = vmax.f32 %v1156_v32, 0.0  ;;  %v1159_v55 = vadd.f32 %v2373_v49, %v1158_v47 }
 0x28a   :  { %v1319_v29 = vmax.f32 %v1317_v30, %v1318_v33  ;;  %v1334_v8 = vrot.slane %v1272_v2, 4  ;;  %v1273_v35 = vmax.f32 %v1167_v44, 0.0  ;;  %v1314_v53 = vrot.slane %v1313_v43, 1 }
 0x28b   :  { %v1302_v24 = vrot.slane %v1301_v48, 1  ;;  %v1307_v61 = vmax.f32 %v1305_v52, %v1306_v50  ;;  %v1322_v38 = vrot.slane %v1270_v31, 4  ;;  %v1271_v28 = vmax.f32 %v1159_v55, 0.0 }
 0x28c   :  { %v1335_v57 = vmax.f32 %v1272_v2, %v1334_v8  ;;  %v1340_v36 = vrot.slane %v1273_v35, 4  ;;  %v1320_v60 = vrot.slane %v1319_v29, 1  ;;  %v1315_v54 = vmax.f32 %v1313_v43, %v1314_v53 }
 0x28d   :  { %v1308_v58 = vrot.slane %v1307_v61, 1  ;;  %v1323_v56 = vmax.f32 %v1270_v31, %v1322_v38  ;;  %v1328_v62 = vrot.slane %v1271_v28, 4  ;;  %v1303_v3 = vmax.f32 %v1301_v48, %v1302_v24 }
 0x28e   :  { %v1336_v41 = vrot.slane %v1335_v57, 2  ;;  %v1341_v63 = vmax.f32 %v1273_v35, %v1340_v36  ;;  %v1321_v12 = vmax.f32 %v1319_v29, %v1320_v60 }
 0x28f   :  { %v1309_v10 = vmax.f32 %v1307_v61, %v1308_v58  ;;  %v1324_v45 = vrot.slane %v1323_v56, 2  ;;  %v1329_v9 = vmax.f32 %v1271_v28, %v1328_v62 }
 0x290   :  { %v1337_v11 = vmax.f32 %v1335_v57, %v1336_v41  ;;  %v1342_v23 = vrot.slane %v1341_v63, 2 }
 0x291   :  { %v1523_v25 = vsel %vm1522_vm2, %v1309_v10, %v1303_v3  ;;  %v1325_v46 = vmax.f32 %v1323_v56, %v1324_v45  ;;  %v1330_v13 = vrot.slane %v1329_v9, 2 }
 0x292   :  { %v1525_v59 = vsel %vm1524_vm3, %v1315_v54, %v1523_v25  ;;  %v1343_v14 = vmax.f32 %v1341_v63, %v1342_v23  ;;  %v1338_v15 = vrot.slane %v1337_v11, 1 }
 0x293   :  { %v1326_v17 = vrot.slane %v1325_v46, 1  ;;  %v1527_v0 = vsel %vm1526_vm4, %v1321_v12, %v1525_v59  ;;  %v1331_v6 = vmax.f32 %v1329_v9, %v1330_v13 }
 0x294   :  { %v1344_v18 = vrot.slane %v1343_v14, 1  ;;  %v1339_v19 = vmax.f32 %v1337_v11, %v1338_v15 }
 0x295   :  { %v1327_v7 = vmax.f32 %v1325_v46, %v1326_v17  ;;  %v1332_v51 = vrot.slane %v1331_v6, 1 }
 0x296   :  { %v1345_v1 = vmax.f32 %v1343_v14, %v1344_v18 }
 0x297   :  { %v1529_v4 = vsel %vm1528_vm5, %v1327_v7, %v1527_v0  ;;  %v1333_v16 = vmax.f32 %v1331_v6, %v1332_v51 }
 0x299   :  { %v1531_v20 = vsel %vm1530_vm6, %v1333_v16, %v1529_v4 }
 0x29a   :  { %v1533_v5 = vsel %vm1532_vm7, %v1339_v19, %v1531_v20 }
 0x29b   :  { %v1535_v21 = vsel %vm1534_vm8, %v1345_v1, %v1533_v5 }
 0x29c   :  { %1561 = vst [vmem:[#allocation2] sm:$0xff] %v1535_v21 }
 0x2aa   :  { %v1714_v22 = vpop.f32.mrb[8].mxu1 }
 0x2ab   :  { %v1180_v26 = vadd.f32 %v1714_v22, %v2373_v49  ;;  %v1171_v27 = vpop.f32.mrb[9].mxu1 }
 0x2ac   :  { %v1172_v42 = vadd.f32 %v2373_v49, %v1171_v27  ;;  %v1715_v30 = vpop.f32.mrb[10].mxu1 }
 0x2ad   :  { %v1276_v34 = vmax.f32 %v1180_v26, 0.0  ;;  %v1183_v37 = vadd.f32 %v1715_v30, %v2373_v49  ;;  %v1174_v40 = vpop.f32.mrb[11].mxu1 }
 0x2ae   :  { %v1274_v52 = vmax.f32 %v1172_v42, 0.0  ;;  %v1175_v32 = vadd.f32 %v2373_v49, %v1174_v40 }
 0x2af   :  { %v1358_v39 = vrot.slane %v1276_v34, 4  ;;  %v1277_v43 = vmax.f32 %v1183_v37, 0.0 }
 0x2b0   :  { %v1346_v33 = vrot.slane %v1274_v52, 4  ;;  %v1275_v2 = vmax.f32 %v1175_v32, 0.0 }
 0x2b1   :  { %v1359_v44 = vmax.f32 %v1276_v34, %v1358_v39  ;;  %v1364_v47 = vrot.slane %v1277_v43, 4 }
 0x2b2   :  { %v1347_v48 = vmax.f32 %v1274_v52, %v1346_v33  ;;  %v1352_v50 = vrot.slane %v1275_v2, 4 }
 0x2b3   :  { %v1360_v31 = vrot.slane %v1359_v44, 2  ;;  %v1365_v55 = vmax.f32 %v1277_v43, %v1364_v47 }
 0x2b4   :  { %v1348_v29 = vrot.slane %v1347_v48, 2  ;;  %v1353_v8 = vmax.f32 %v1275_v2, %v1352_v50 }
 0x2b5   :  { %v1361_v35 = vmax.f32 %v1359_v44, %v1360_v31  ;;  %v1366_v24 = vrot.slane %v1365_v55, 2 }
 0x2b6   :  { %v1349_v61 = vmax.f32 %v1347_v48, %v1348_v29  ;;  %v1354_v38 = vrot.slane %v1353_v8, 2 }
 0x2b7   :  { %v1367_v28 = vmax.f32 %v1365_v55, %v1366_v24  ;;  %v1362_v36 = vrot.slane %v1361_v35, 1 }
 0x2b8   :  { %v1350_v53 = vrot.slane %v1349_v61, 1  ;;  %v1355_v57 = vmax.f32 %v1353_v8, %v1354_v38 }
 0x2b9   :  { %v1368_v60 = vrot.slane %v1367_v28, 1  ;;  %v1363_v41 = vmax.f32 %v1361_v35, %v1362_v36 }
 0x2ba   :  { %v1356_v58 = vrot.slane %v1355_v57, 1  ;;  %v1351_v56 = vmax.f32 %v1349_v61, %v1350_v53 }
 0x2bb   :  { %v1369_v63 = vmax.f32 %v1367_v28, %v1368_v60 }
 0x2bc   :  { %v1357_v62 = vmax.f32 %v1355_v57, %v1356_v58 }
 0x2be   :  { %v1536_v3 = vsel %vm1522_vm2, %v1357_v62, %v1351_v56 }
 0x2bf   :  { %v1537_v10 = vsel %vm1524_vm3, %v1363_v41, %v1536_v3  ;;  %v1718_v45 = vpop.f32.mrb[12].mxu1 }
 0x2c0   :  { %v1196_v9 = vadd.f32 %v1718_v45, %v2373_v49  ;;  %v1187_v54 = vpop.f32.mrb[13].mxu1  ;;  %v1538_v11 = vsel %vm1526_vm4, %v1369_v63, %v1537_v10 }
 0x2c1   :  { %v1188_v23 = vadd.f32 %v2373_v49, %v1187_v54  ;;  %v1719_v12 = vpop.f32.mrb[14].mxu1 }
 0x2c2   :  { %v1280_v25 = vmax.f32 %v1196_v9, 0.0  ;;  %v1199_v46 = vadd.f32 %v1719_v12, %v2373_v49  ;;  %v1190_v13 = vpop.f32.mrb[15].mxu1 }
 0x2c3   :  { %v1278_v59 = vmax.f32 %v1188_v23, 0.0  ;;  %v1191_v14 = vadd.f32 %v2373_v49, %v1190_v13 }
 0x2c4   :  { %v1382_v17 = vrot.slane %v1280_v25, 4  ;;  %v1281_v0 = vmax.f32 %v1199_v46, 0.0 }
 0x2c5   :  { %v1370_v6 = vrot.slane %v1278_v59, 4  ;;  %v1279_v15 = vmax.f32 %v1191_v14, 0.0 }
 0x2c6   :  { %v1383_v7 = vmax.f32 %v1280_v25, %v1382_v17  ;;  %v1388_v18 = vrot.slane %v1281_v0, 4 }
 0x2c7   :  { %v1371_v51 = vmax.f32 %v1278_v59, %v1370_v6  ;;  %v1376_v4 = vrot.slane %v1279_v15, 4 }
 0x2c8   :  { %v1384_v16 = vrot.slane %v1383_v7, 2  ;;  %v1389_v19 = vmax.f32 %v1281_v0, %v1388_v18 }
 0x2c9   :  { %v1372_v1 = vrot.slane %v1371_v51, 2  ;;  %v1377_v20 = vmax.f32 %v1279_v15, %v1376_v4 }
 0x2ca   :  { %v1385_v5 = vmax.f32 %v1383_v7, %v1384_v16  ;;  %v1390_v21 = vrot.slane %v1389_v19, 2 }
 0x2cb   :  { %v1373_v22 = vmax.f32 %v1371_v51, %v1372_v1  ;;  %v1378_v26 = vrot.slane %v1377_v20, 2 }
 0x2cc   :  { %v1391_v27 = vmax.f32 %v1389_v19, %v1390_v21  ;;  %v1386_v34 = vrot.slane %v1385_v5, 1 }
 0x2cd   :  { %v1374_v42 = vrot.slane %v1373_v22, 1  ;;  %v1379_v30 = vmax.f32 %v1377_v20, %v1378_v26 }
 0x2ce   :  { %v1392_v40 = vrot.slane %v1391_v27, 1  ;;  %v1387_v43 = vmax.f32 %v1385_v5, %v1386_v34 }
 0x2cf   :  { %v1375_v37 = vmax.f32 %v1373_v22, %v1374_v42  ;;  %v1380_v52 = vrot.slane %v1379_v30, 1 }
 0x2d0   :  { %v1393_v33 = vmax.f32 %v1391_v27, %v1392_v40 }
 0x2d1   :  { %v1539_v32 = vsel %vm1528_vm5, %v1375_v37, %v1538_v11  ;;  %v1381_v39 = vmax.f32 %v1379_v30, %v1380_v52 }
 0x2d3   :  { %v1540_v2 = vsel %vm1530_vm6, %v1381_v39, %v1539_v32 }
 0x2d4   :  { %v1541_v44 = vsel %vm1532_vm7, %v1387_v43, %v1540_v2 }
 0x2d5   :  { %v1542_v47 = vsel %vm1534_vm8, %v1393_v33, %v1541_v44 }
 0x2d6   :  { %1562 = vst [vmem:[#allocation2 + $0x8] sm:$0xff] %v1542_v47 }
 0x2e4   :  { %v1722_v48 = vpop.f32.mrb[16].mxu1 }
 0x2e5   :  { %v1212_v50 = vadd.f32 %v1722_v48, %v2373_v49  ;;  %v1203_v31 = vpop.f32.mrb[17].mxu1 }
 0x2e6   :  { %v1204_v55 = vadd.f32 %v2373_v49, %v1203_v31  ;;  %v1723_v29 = vpop.f32.mrb[18].mxu1 }
 0x2e7   :  { %v1284_v8 = vmax.f32 %v1212_v50, 0.0  ;;  %v1215_v35 = vadd.f32 %v1723_v29, %v2373_v49  ;;  %v1206_v24 = vpop.f32.mrb[19].mxu1 }
 0x2e8   :  { %v1282_v61 = vmax.f32 %v1204_v55, 0.0  ;;  %v1207_v38 = vadd.f32 %v2373_v49, %v1206_v24 }
 0x2e9   :  { %v1406_v28 = vrot.slane %v1284_v8, 4  ;;  %v1285_v53 = vmax.f32 %v1215_v35, 0.0 }
 0x2ea   :  { %v1394_v57 = vrot.slane %v1282_v61, 4  ;;  %v1283_v36 = vmax.f32 %v1207_v38, 0.0 }
 0x2eb   :  { %v1407_v60 = vmax.f32 %v1284_v8, %v1406_v28  ;;  %v1412_v58 = vrot.slane %v1285_v53, 4 }
 0x2ec   :  { %v1395_v56 = vmax.f32 %v1282_v61, %v1394_v57  ;;  %v1400_v62 = vrot.slane %v1283_v36, 4 }
 0x2ed   :  { %v1408_v41 = vrot.slane %v1407_v60, 2  ;;  %v1413_v63 = vmax.f32 %v1285_v53, %v1412_v58 }
 0x2ee   :  { %v1396_v3 = vrot.slane %v1395_v56, 2  ;;  %v1401_v10 = vmax.f32 %v1283_v36, %v1400_v62 }
 0x2ef   :  { %v1409_v45 = vmax.f32 %v1407_v60, %v1408_v41  ;;  %v1414_v9 = vrot.slane %v1413_v63, 2 }
 0x2f0   :  { %v1397_v54 = vmax.f32 %v1395_v56, %v1396_v3  ;;  %v1402_v11 = vrot.slane %v1401_v10, 2 }
 0x2f1   :  { %v1415_v23 = vmax.f32 %v1413_v63, %v1414_v9  ;;  %v1410_v46 = vrot.slane %v1409_v45, 1 }
 0x2f2   :  { %v1398_v12 = vrot.slane %v1397_v54, 1  ;;  %v1403_v25 = vmax.f32 %v1401_v10, %v1402_v11 }
 0x2f3   :  { %v1416_v13 = vrot.slane %v1415_v23, 1  ;;  %v1411_v0 = vmax.f32 %v1409_v45, %v1410_v46 }
 0x2f4   :  { %v1404_v59 = vrot.slane %v1403_v25, 1  ;;  %v1399_v14 = vmax.f32 %v1397_v54, %v1398_v12 }
 0x2f5   :  { %v1417_v6 = vmax.f32 %v1415_v23, %v1416_v13 }
 0x2f6   :  { %v1405_v17 = vmax.f32 %v1403_v25, %v1404_v59 }
 0x2f8   :  { %v1543_v15 = vsel %vm1522_vm2, %v1405_v17, %v1399_v14 }
 0x2f9   :  { %v1544_v7 = vsel %vm1524_vm3, %v1411_v0, %v1543_v15 }
 0x2fa   :  { %v1545_v18 = vsel %vm1526_vm4, %v1417_v6, %v1544_v7 }
 0x305   :  { %v1726_v51 = vpop.f32.mrb[20].mxu1 }
 0x306   :  { %v1228_v4 = vadd.f32 %v1726_v51, %v2373_v49  ;;  %v1219_v16 = vpop.f32.mrb[21].mxu1 }
 0x307   :  { %v1220_v19 = vadd.f32 %v2373_v49, %v1219_v16  ;;  %v1727_v1 = vpop.f32.mrb[22].mxu1 }
 0x308   :  { %v1288_v20 = vmax.f32 %v1228_v4, 0.0  ;;  %v1231_v5 = vadd.f32 %v1727_v1, %v2373_v49  ;;  %v1222_v21 = vpop.f32.mrb[23].mxu1 }
 0x309   :  { %v1286_v22 = vmax.f32 %v1220_v19, 0.0  ;;  %v1223_v26 = vadd.f32 %v2373_v49, %v1222_v21 }
 0x30a   :  { %v1430_v27 = vrot.slane %v1288_v20, 4  ;;  %v1289_v42 = vmax.f32 %v1231_v5, 0.0 }
 0x30b   :  { %v1418_v30 = vrot.slane %v1286_v22, 4  ;;  %v1287_v34 = vmax.f32 %v1223_v26, 0.0 }
 0x30c   :  { %v1431_v37 = vmax.f32 %v1288_v20, %v1430_v27  ;;  %v1436_v40 = vrot.slane %v1289_v42, 4 }
 0x30d   :  { %v1419_v52 = vmax.f32 %v1286_v22, %v1418_v30  ;;  %v1424_v32 = vrot.slane %v1287_v34, 4 }
 0x30e   :  { %v1432_v39 = vrot.slane %v1431_v37, 2  ;;  %v1437_v43 = vmax.f32 %v1289_v42, %v1436_v40 }
 0x30f   :  { %v1420_v33 = vrot.slane %v1419_v52, 2  ;;  %v1425_v2 = vmax.f32 %v1287_v34, %v1424_v32 }
 0x310   :  { %v1433_v44 = vmax.f32 %v1431_v37, %v1432_v39  ;;  %v1438_v47 = vrot.slane %v1437_v43, 2 }
 0x311   :  { %v1421_v48 = vmax.f32 %v1419_v52, %v1420_v33  ;;  %v1426_v50 = vrot.slane %v1425_v2, 2 }
 0x312   :  { %v1439_v31 = vmax.f32 %v1437_v43, %v1438_v47  ;;  %v1434_v8 = vrot.slane %v1433_v44, 1 }
 0x313   :  { %v1422_v55 = vrot.slane %v1421_v48, 1  ;;  %v1427_v29 = vmax.f32 %v1425_v2, %v1426_v50 }
 0x314   :  { %v1440_v24 = vrot.slane %v1439_v31, 1  ;;  %v1435_v53 = vmax.f32 %v1433_v44, %v1434_v8 }
 0x315   :  { %v1423_v35 = vmax.f32 %v1421_v48, %v1422_v55  ;;  %v1428_v61 = vrot.slane %v1427_v29, 1 }
 0x316   :  { %v1441_v57 = vmax.f32 %v1439_v31, %v1440_v24 }
 0x317   :  { %v1546_v38 = vsel %vm1528_vm5, %v1423_v35, %v1545_v18  ;;  %v1429_v28 = vmax.f32 %v1427_v29, %v1428_v61 }
 0x319   :  { %v1547_v36 = vsel %vm1530_vm6, %v1429_v28, %v1546_v38 }
 0x31a   :  { %v1548_v60 = vsel %vm1532_vm7, %v1435_v53, %v1547_v36 }
 0x31b   :  { %v1549_v58 = vsel %vm1534_vm8, %v1441_v57, %v1548_v60 }
 0x31c   :  { %1563 = vst [vmem:[#allocation2 + $0x10] sm:$0xff] %v1549_v58 }
 0x32a   :  { %v1730_v56 = vpop.f32.mrb[24].mxu1 }
 0x32b   :  { %v1244_v62 = vadd.f32 %v1730_v56, %v2373_v49  ;;  %v1235_v41 = vpop.f32.mrb[25].mxu1 }
 0x32c   :  { %v1236_v63 = vadd.f32 %v2373_v49, %v1235_v41  ;;  %v1731_v3 = vpop.f32.mrb[26].mxu1 }
 0x32d   :  { %v1292_v10 = vmax.f32 %v1244_v62, 0.0  ;;  %v1247_v45 = vadd.f32 %v1731_v3, %v2373_v49  ;;  %v1238_v9 = vpop.f32.mrb[27].mxu1 }
 0x32e   :  { %v1290_v54 = vmax.f32 %v1236_v63, 0.0  ;;  %v1239_v11 = vadd.f32 %v2373_v49, %v1238_v9 }
 0x32f   :  { %v1454_v23 = vrot.slane %v1292_v10, 4  ;;  %v1293_v12 = vmax.f32 %v1247_v45, 0.0 }
 0x330   :  { %v1442_v25 = vrot.slane %v1290_v54, 4  ;;  %v1291_v46 = vmax.f32 %v1239_v11, 0.0 }
 0x331   :  { %v1455_v13 = vmax.f32 %v1292_v10, %v1454_v23  ;;  %v1460_v59 = vrot.slane %v1293_v12, 4 }
 0x332   :  { %v1443_v14 = vmax.f32 %v1290_v54, %v1442_v25  ;;  %v1448_v17 = vrot.slane %v1291_v46, 4 }
 0x333   :  { %v1456_v0 = vrot.slane %v1455_v13, 2  ;;  %v1461_v6 = vmax.f32 %v1293_v12, %v1460_v59 }
 0x334   :  { %v1444_v15 = vrot.slane %v1443_v14, 2  ;;  %v1449_v7 = vmax.f32 %v1291_v46, %v1448_v17 }
 0x335   :  { %v1457_v18 = vmax.f32 %v1455_v13, %v1456_v0  ;;  %v1462_v51 = vrot.slane %v1461_v6, 2 }
 0x336   :  { %v1445_v4 = vmax.f32 %v1443_v14, %v1444_v15  ;;  %v1450_v16 = vrot.slane %v1449_v7, 2 }
 0x337   :  { %v1463_v19 = vmax.f32 %v1461_v6, %v1462_v51  ;;  %v1458_v5 = vrot.slane %v1457_v18, 1 }
 0x338   :  { %v1446_v1 = vrot.slane %v1445_v4, 1  ;;  %v1451_v20 = vmax.f32 %v1449_v7, %v1450_v16 }
 0x339   :  { %v1464_v21 = vrot.slane %v1463_v19, 1  ;;  %v1459_v42 = vmax.f32 %v1457_v18, %v1458_v5 }
 0x33a   :  { %v1452_v22 = vrot.slane %v1451_v20, 1  ;;  %v1447_v26 = vmax.f32 %v1445_v4, %v1446_v1 }
 0x33b   :  { %v1465_v30 = vmax.f32 %v1463_v19, %v1464_v21 }
 0x33c   :  { %v1453_v27 = vmax.f32 %v1451_v20, %v1452_v22 }
 0x33e   :  { %v1550_v34 = vsel %vm1522_vm2, %v1453_v27, %v1447_v26 }
 0x33f   :  { %v1551_v37 = vsel %vm1524_vm3, %v1459_v42, %v1550_v34 }
 0x340   :  { %v1552_v40 = vsel %vm1526_vm4, %v1465_v30, %v1551_v37 }
 0x34b   :  { %v1734_v52 = vpop.f32.mrb[28].mxu1 }
 0x34c   :  { %v1260_v32 = vadd.f32 %v1734_v52, %v2373_v49  ;;  %v1251_v39 = vpop.f32.mrb[29].mxu1 }
 0x34d   :  { %v1252_v43 = vadd.f32 %v2373_v49, %v1251_v39  ;;  %v1735_v33 = vpop.f32.mrb[30].mxu1 }
 0x34e   :  { %v1296_v2 = vmax.f32 %v1260_v32, 0.0  ;;  %v1263_v44 = vadd.f32 %v1735_v33, %v2373_v49  ;;  %v1254_v47 = vpop.f32.mrb[31].mxu1 }
 0x34f   :  { %v1294_v48 = vmax.f32 %v1252_v43, 0.0  ;;  %v1255_v50 = vadd.f32 %v2373_v49, %v1254_v47 }
 0x350   :  { %v1478_v31 = vrot.slane %v1296_v2, 4  ;;  %v1297_v55 = vmax.f32 %v1263_v44, 0.0 }
 0x351   :  { %v1466_v29 = vrot.slane %v1294_v48, 4  ;;  %v1295_v8 = vmax.f32 %v1255_v50, 0.0 }
 0x352   :  { %v1479_v35 = vmax.f32 %v1296_v2, %v1478_v31  ;;  %v1484_v24 = vrot.slane %v1297_v55, 4 }
 0x353   :  { %v1467_v61 = vmax.f32 %v1294_v48, %v1466_v29  ;;  %v1472_v38 = vrot.slane %v1295_v8, 4 }
 0x354   :  { %v1480_v28 = vrot.slane %v1479_v35, 2  ;;  %v1485_v53 = vmax.f32 %v1297_v55, %v1484_v24 }
 0x355   :  { %v1468_v57 = vrot.slane %v1467_v61, 2  ;;  %v1473_v36 = vmax.f32 %v1295_v8, %v1472_v38 }
 0x356   :  { %v1481_v60 = vmax.f32 %v1479_v35, %v1480_v28  ;;  %v1486_v58 = vrot.slane %v1485_v53, 2 }
 0x357   :  { %v1469_v56 = vmax.f32 %v1467_v61, %v1468_v57  ;;  %v1474_v62 = vrot.slane %v1473_v36, 2 }
 0x358   :  { %v1487_v41 = vmax.f32 %v1485_v53, %v1486_v58  ;;  %v1482_v49 = vrot.slane %v1481_v60, 1 }
 0x359   :  { %v1470_v63 = vrot.slane %v1469_v56, 1  ;;  %v1475_v3 = vmax.f32 %v1473_v36, %v1474_v62 }
 0x35a   :  { %v1488_v45 = vrot.slane %v1487_v41, 1  ;;  %v1483_v23 = vmax.f32 %v1481_v60, %v1482_v49 }
 0x35b   :  { %v1471_v10 = vmax.f32 %v1469_v56, %v1470_v63  ;;  %v1476_v9 = vrot.slane %v1475_v3, 1 }
 0x35c   :  { %v1489_v12 = vmax.f32 %v1487_v41, %v1488_v45 }
 0x35d   :  { %v1553_v54 = vsel %vm1528_vm5, %v1471_v10, %v1552_v40  ;;  %v1477_v11 = vmax.f32 %v1475_v3, %v1476_v9 }
 0x35f   :  { %v1554_v25 = vsel %vm1530_vm6, %v1477_v11, %v1553_v54 }
 0x360   :  { %v1555_v46 = vsel %vm1532_vm7, %v1483_v23, %v1554_v25 }
 0x361   :  { %v1556_v13 = vsel %vm1534_vm8, %v1489_v12, %v1555_v46 }
 0x362   :  { %1564 = vst [vmem:[#allocation2 + $0x18] sm:$0xff] %v1556_v13 }
 0x363   :  { %1803 = shalt.err (!%p1800_p4)
}
 0x364   :  { %s1804_s13 = scalar_lea.hbm %s2454_s7, 512 }
 0x365   :  { %p1805_p5 = scmp.ne.s32.totalorder %s2454_s7, %s1804_s13  ;;  %p1808_p6 = scmp.lt.u32.totalorder %s1804_s13, %s2454_s7 }
 0x367   :  { %p1810_p7 = pnand %p1808_p6, %p1805_p5 }
 0x369   :  { %1813 = shalt.err (!%p1810_p7)
}
 0x36a   :  { %s1820_s3 = smov 128   ;;  %s1821_s18 = smov 8  }
 0x36b   :  { %1576 = dma.vmem_to_hbm [thread:$0]  %s1571_s9, 512, %s2454_s7, [#allocation3], %s1820_s3, %s1820_s3, %s1821_s18  }
 0x36c   :  { %1814 = dma.done.wait [#allocation3], 512  }
 0x36d   :  { %1815 = vsyncadd [#allocation3], 4294966784 }
 0x36e   :  { %1580 = vsyncpa [#allocation3], 1 }

</bundles_post_ra>
